<compile_context>
chip_gen: v5e
topology: v5e:2x2
jax: 0.10.0
libtpu: 0.0.40
codegen_flags: <defaults>
</compile_context>

<pallas_src>
import functools

import jax
import jax.numpy as jnp
from jax.experimental import pallas as pl
from jax.experimental.pallas import tpu as pltpu

LN_EPS = 1e-5


def _patch_expand_kernel(x_ref, w_ref, g_ref, b_ref, o_ref, *, rh, wpix, c):
    """One grid step: `rh` image rows (rh*W pixels) of one batch element.

    x_ref: (1, dim, rh*W)  NCHW slab: channels on sublanes, pixels on lanes.
    w_ref: (dim, 4c)       expand weight (= torch weight.T), grid-invariant.
    g_ref, b_ref: (1, c)   LayerNorm affine params (f32), grid-invariant.
    o_ref: (rh, 2, W, 2c)  rows = (b, h); dims = (p1, w, (p2, c)).
    """
    tm = rh * wpix
    x = x_ref[0]                                       # (dim, tm)

    # Transposed-LHS contraction: y[p, j] = sum_d x[d, p] * w[d, j].
    # This absorbs the NCHW -> pixel-major permute into the matmul itself;
    # no separate HBM transpose of the input is needed.
    y = jax.lax.dot_general(
        x, w_ref[...], (((0,), (0,)), ((), ())),
        preferred_element_type=jnp.float32)            # (tm, 4c) f32 accumulate

    # Hoist affine params + broadcasts out of the 4-chunk loop
    # (JAX does not CSE broadcast_in_dim).
    g = jnp.broadcast_to(g_ref[...].astype(jnp.float32), (tm, c))
    b = jnp.broadcast_to(b_ref[...].astype(jnp.float32), (tm, c))

    inv_c = 1.0 / c
    lane_aligned = (c % 128 == 0)

    for p1 in range(2):
        chunks = []
        for p2 in range(2):
            p = 2 * p1 + p2
            yp = y[:, p * c:(p + 1) * c]                               # (tm, c)
            mean = jnp.sum(yp, axis=-1, keepdims=True) * inv_c
            diff = yp - mean
            var = jnp.sum(diff * diff, axis=-1, keepdims=True) * inv_c  # two-pass
            normed = diff * jax.lax.rsqrt(var + LN_EPS) * g + b         # rsqrt -> EUP
            if lane_aligned:
                # Direct lane-aligned slice store (unmasked vst); no concat.
                o_ref[:, p1, :, p2 * c:(p2 + 1) * c] = (
                    normed.reshape(rh, wpix, c).astype(o_ref.dtype))
            else:
                chunks.append(normed)
        if not lane_aligned:
            # 2c < 128: one store of the (tm, 2c) pair per p1 halves the number
            # of masked sub-128-lane stores vs per-p2 stores.
            o_ref[:, p1, :, :] = (
                jnp.concatenate(chunks, axis=-1)
                .reshape(rh, wpix, 2 * c).astype(o_ref.dtype))


def _vmem_budget_bytes():
    """Scoped-VMEM budget to request.  Physical VMEM is 128 MiB on v5e/v6e and
    64 MiB on v7x, but the *default* scoped limit is only 16/32 MiB, so we
    always pass vmem_limit_bytes explicitly."""
    try:
        cap = getattr(pltpu.get_tpu_info(), "vmem_capacity_bytes", None)
        if cap:
            return int(cap) * 3 // 4
    except Exception:
        pass
    return 48 * 1024 * 1024   # conservative: fits v7x's 64 MiB physical VMEM


def _pick_rows_per_step(B, H, W, dim, c, in_esize, out_esize,
                        target_pixels, budget, min_steps=8):
    """Choose image rows per grid step.  Legal rh: divides H and (rh*W is a
    multiple of 128 lanes, or rh == H).  Prefers the largest tile <= target
    that fits the VMEM budget while leaving >= min_steps total grid steps
    (so each TensorCore of a 2-TC chip still has a few steps to pipeline)."""
    out_lanes = -(-2 * c // 128) * 128

    def est_bytes(rh):
        tpix = rh * W
        return (2 * dim * tpix * in_esize                  # x block (double-buffered)
                + 2 * dim * 4 * c * in_esize               # weight (double-buffered)
                + 2 * rh * 2 * W * out_lanes * out_esize   # out block (double-buffered)
                + 16 * tpix * dim)                         # f32 matmul result + LN temps

    legal = [rh for rh in range(H, 0, -1)
             if H % rh == 0 and ((rh * W) % 128 == 0 or rh == H)]
    fitting = [rh for rh in legal
               if rh * W <= target_pixels and est_bytes(rh) <= budget]
    if not fitting:
        fitting = [rh for rh in legal if est_bytes(rh) <= budget]
        if not fitting:
            return None
    for rh in fitting:                        # descending: largest tile first
        if B * (H // rh) >= min_steps:
            return rh
    return fitting[0]                         # tiny problem: take the largest tile


def _patch_expand_unfused(x_nchw, w, gamma, beta, out_dtype):
    """Plain-XLA fallback for shapes the fused kernel does not tile."""
    B, dim, H, W = x_nchw.shape
    c = dim // 2
    x = jnp.transpose(x_nchw, (0, 2, 3, 1)).astype(jnp.float32)
    y = x @ w.astype(jnp.float32)
    y = y.reshape(B, H, W, 2, 2, c)
    y = jnp.transpose(y, (0, 1, 3, 2, 4, 5)).reshape(B, 2 * H, 2 * W, c)
    mean = jnp.mean(y, axis=-1, keepdims=True)
    var = jnp.mean(jnp.square(y - mean), axis=-1, keepdims=True)
    y = (y - mean) * jax.lax.rsqrt(var + LN_EPS) * gamma.astype(jnp.float32) \
        + beta.astype(jnp.float32)
    return y.astype(out_dtype)


def patch_expand(x_nchw, w, gamma, beta, *, compute_dtype=jnp.bfloat16,
                 out_dtype=None, target_pixels=None):
    """x_nchw: (B, dim, H, W) -> (B, 2H, 2W, dim//2), matching the PyTorch module.

    w     : (dim, 2*dim) = nn.Linear(dim, 2*dim, bias=False).weight.T
    gamma : (dim//2,), beta : (dim//2,)  LayerNorm affine params.
    compute_dtype: data dtype for x / w / output (default bf16: halves HBM
                   traffic and uses the native bf16 MXU; matmul accumulation and
                   LayerNorm statistics stay f32).  Pass jnp.float32 for exact.
    """
    B, dim, H, W = x_nchw.shape
    assert dim % 2 == 0
    assert w.shape == (dim, 2 * dim)
    c = dim // 2
    out_dtype = compute_dtype if out_dtype is None else out_dtype

    budget = _vmem_budget_bytes()
    if target_pixels is None:
        # Bigger tiles on 128 MiB parts (v5e/v6e); v7x-sized budget stays at 1024.
        target_pixels = 2048 if budget >= 72 * 1024 * 1024 else 1024

    in_esize = jnp.dtype(compute_dtype).itemsize
    out_esize = jnp.dtype(out_dtype).itemsize

    rh = None
    if W % 8 == 0:   # in-kernel (rh*W, c) -> (rh, W, c) split must be tile-aligned
        rh = _pick_rows_per_step(B, H, W, dim, c, in_esize, out_esize,
                                 target_pixels, budget)
    if rh is None:
        # TODO(synk): odd widths / dims too large for any legal tile use plain XLA.
        return _patch_expand_unfused(x_nchw, w, gamma, beta, out_dtype)

    # Metadata-only reshape (no HBM pass): NCHW with the spatial dims merged.
    x3 = x_nchw.reshape(B, dim, H * W).astype(compute_dtype)
    w2 = w.astype(compute_dtype)
    gamma2 = gamma.reshape(1, c).astype(jnp.float32)
    beta2 = beta.reshape(1, c).astype(jnp.float32)

    tpix = rh * W
    hb = H // rh
    grid = (B, hb)
    kernel = functools.partial(_patch_expand_kernel, rh=rh, wpix=W, c=c)

    y = pl.pallas_call(
        kernel,
        out_shape=jax.ShapeDtypeStruct((B * H, 2, W, 2 * c), out_dtype),
        grid_spec=pltpu.PrefetchScalarGridSpec(
            num_scalar_prefetch=0,
            grid=grid,
            in_specs=[
                # NCHW slab: (1, dim, rh*W) -- channels on sublanes, pixels on
                # lanes; the permute is handled by the transposed matmul.
                pl.BlockSpec((1, dim, tpix), lambda b, i: (b, 0, i)),
                # Grid-invariant operands (constant block index => DMA'd once).
                pl.BlockSpec((dim, 2 * dim), lambda b, i: (0, 0)),
                pl.BlockSpec((1, c), lambda b, i: (0, 0)),
                pl.BlockSpec((1, c), lambda b, i: (0, 0)),
            ],
            out_specs=pl.BlockSpec((rh, 2, W, 2 * c),
                                   lambda b, i: (b * hb + i, 0, 0, 0)),
        ),
        compiler_params=pltpu.CompilerParams(
            dimension_semantics=("parallel", "parallel"),
            vmem_limit_bytes=budget),
    )(x3, w2, gamma2, beta2)

    # (B*H, 2, W, 2c) row-major is exactly (b, h, p1, w, p2, c): the pixel
    # shuffle is already materialized -> free reshape, no extra HBM pass.
    return y.reshape(B, 2 * H, 2 * W, c)


def patch_expand_ref(x_nchw, w, gamma, beta):
    """Pure-JAX (f32) reference of the PyTorch forward."""
    B, dim, H, W = x_nchw.shape
    c = dim // 2
    x = jnp.transpose(x_nchw, (0, 2, 3, 1))                  # (B,H,W,dim)
    y = x @ w                                                # (B,H,W,2*dim)
    y = y.reshape(B, H, W, 2, 2, c)
    y = jnp.transpose(y, (0, 1, 3, 2, 4, 5)).reshape(B, 2 * H * 2 * W, c)
    mean = jnp.mean(y, axis=-1, keepdims=True)
    var = jnp.mean((y - mean) ** 2, axis=-1, keepdims=True)
    y = (y - mean) * jax.lax.rsqrt(var + LN_EPS) * gamma + beta
    return y.reshape(B, 2 * H, 2 * W, c)


if __name__ == "__main__":
    def run_case(B, dim, H, W, case_idx, compute_dtype, atol):
        key = jax.random.fold_in(jax.random.PRNGKey(0), case_idx)
        kx, kw, kg, kb = jax.random.split(key, 4)
        x = jax.random.normal(kx, (B, dim, H, W), dtype=jnp.float32)
        # nn.Linear(dim, 2*dim, bias=False): torch weight is (2*dim, dim); pass W^T.
        w = jax.random.normal(kw, (dim, 2 * dim), dtype=jnp.float32) * 0.05
        gamma = 1.0 + 0.1 * jax.random.normal(kg, (dim // 2,), dtype=jnp.float32)
        beta = 0.1 * jax.random.normal(kb, (dim // 2,), dtype=jnp.float32)

        out = jax.block_until_ready(
            patch_expand(x, w, gamma, beta, compute_dtype=compute_dtype))
        ref = patch_expand_ref(x, w, gamma, beta)
        assert out.shape == (B, 2 * H, 2 * W, dim // 2), out.shape
        err = float(jnp.max(jnp.abs(out.astype(jnp.float32) - ref)))
        assert err <= atol, (case_idx, err)

    # Exact checks on the f32 path (tight tolerance).
    run_case(2, 64, 8, 8, 0, jnp.float32, 5e-4)      # c = 32  -> 2c < 128 pair-store path
    run_case(2, 256, 16, 16, 1, jnp.float32, 5e-4)   # c = 128 -> lane-aligned store path
    # Default bf16 data path (half the HBM traffic); looser tolerance vs f32 ref.
    run_case(2, 256, 16, 16, 2, jnp.bfloat16, 1.5e-1)
    run_case(2, 64, 8, 8, 3, jnp.bfloat16, 1.5e-1)
    print("KERNEL_OK")
</pallas_src>

<mosaic_0001>
module attributes {stable_mosaic.version = 11 : i64} {
  func.func @_patch_expand_kernel(%arg0: i32, %arg1: i32, %arg2: memref<1x64x64xf32, #tpu.memory_space<vmem>>, %arg3: memref<64x128xf32, #tpu.memory_space<vmem>>, %arg4: memref<1x32xf32, #tpu.memory_space<vmem>>, %arg5: memref<1x32xf32, #tpu.memory_space<vmem>>, %arg6: memref<8x2x8x64xf32, #tpu.memory_space<vmem>>) attributes {dimension_semantics = [#tpu.dimension_semantics<parallel>, #tpu.dimension_semantics<parallel>], iteration_bounds = array<i64: 2, 1>, scalar_prefetch = 0 : i64, scratch_operands = 0 : i64, tpu.core_type = #tpu.core_type<tc>, window_params = [{transform_indices = @transform_0, window_bounds = array<i64: 1, 64, 64>}, {pipeline_mode = #tpu.pipeline_mode<synchronous>, transform_indices = @transform_1, window_bounds = array<i64: 64, 128>}, {pipeline_mode = #tpu.pipeline_mode<synchronous>, transform_indices = @transform_2, window_bounds = array<i64: 1, 32>}, {pipeline_mode = #tpu.pipeline_mode<synchronous>, transform_indices = @transform_3, window_bounds = array<i64: 1, 32>}, {transform_indices = @transform_4, window_bounds = array<i64: 8, 2, 8, 64>}]} {
    %c0 = arith.constant 0 : index
    %c0_0 = arith.constant 0 : index
    %c0_1 = arith.constant 0 : index
    %0 = vector.load %arg2[%c0, %c0_0, %c0_1] : memref<1x64x64xf32, #tpu.memory_space<vmem>>, vector<1x64x64xf32>
    %1 = vector.shape_cast %0 : vector<1x64x64xf32> to vector<64x64xf32>
    %c0_2 = arith.constant 0 : index
    %c0_3 = arith.constant 0 : index
    %2 = vector.load %arg3[%c0_2, %c0_3] : memref<64x128xf32, #tpu.memory_space<vmem>>, vector<64x128xf32>
    %cst = arith.constant dense<0.000000e+00> : vector<64x128xf32>
    %3 = tpu.matmul %1, %2, %cst {dimension_numbers = #tpu.dot_dimension_numbers<[0], [0], [1], [1], [0, 1, 1, 1], [], []>} : vector<64x64xf32>, vector<64x128xf32>, vector<64x128xf32> -> vector<64x128xf32>
    %c0_4 = arith.constant 0 : index
    %c0_5 = arith.constant 0 : index
    %4 = vector.load %arg4[%c0_4, %c0_5] : memref<1x32xf32, #tpu.memory_space<vmem>>, vector<1x32xf32>
    %5 = vector.shape_cast %4 : vector<1x32xf32> to vector<1x32xf32>
    %6 = vector.broadcast %5 : vector<1x32xf32> to vector<64x32xf32>
    %c0_6 = arith.constant 0 : index
    %c0_7 = arith.constant 0 : index
    %7 = vector.load %arg5[%c0_6, %c0_7] : memref<1x32xf32, #tpu.memory_space<vmem>>, vector<1x32xf32>
    %8 = vector.shape_cast %7 : vector<1x32xf32> to vector<1x32xf32>
    %9 = vector.broadcast %8 : vector<1x32xf32> to vector<64x32xf32>
    %10 = vector.extract_strided_slice %3 {offsets = [0, 0], sizes = [64, 32], strides = [1, 1]} : vector<64x128xf32> to vector<64x32xf32>
    %cst_8 = arith.constant dense<0.000000e+00> : vector<64xf32>
    %11 = vector.multi_reduction <add>, %10, %cst_8 [1] : vector<64x32xf32> to vector<64xf32>
    %12 = vector.shape_cast %11 : vector<64xf32> to vector<64x1xf32>
    %cst_9 = arith.constant 3.125000e-02 : f32
    %13 = vector.broadcast %cst_9 : f32 to vector<64x1xf32>
    %14 = arith.mulf %12, %13 : vector<64x1xf32>
    %15 = vector.broadcast %14 : vector<64x1xf32> to vector<64x32xf32>
    %16 = arith.subf %10, %15 : vector<64x32xf32>
    %17 = arith.mulf %16, %16 : vector<64x32xf32>
    %cst_10 = arith.constant dense<0.000000e+00> : vector<64xf32>
    %18 = vector.multi_reduction <add>, %17, %cst_10 [1] : vector<64x32xf32> to vector<64xf32>
    %19 = vector.shape_cast %18 : vector<64xf32> to vector<64x1xf32>
    %cst_11 = arith.constant 3.125000e-02 : f32
    %20 = vector.broadcast %cst_11 : f32 to vector<64x1xf32>
    %21 = arith.mulf %19, %20 : vector<64x1xf32>
    %cst_12 = arith.constant 9.99999974E-6 : f32
    %22 = vector.broadcast %cst_12 : f32 to vector<64x1xf32>
    %23 = arith.addf %21, %22 : vector<64x1xf32>
    %24 = math.rsqrt %23 : vector<64x1xf32>
    %25 = vector.broadcast %24 : vector<64x1xf32> to vector<64x32xf32>
    %26 = arith.mulf %16, %25 : vector<64x32xf32>
    %27 = arith.mulf %26, %6 : vector<64x32xf32>
    %28 = arith.addf %27, %9 : vector<64x32xf32>
    %29 = vector.extract_strided_slice %3 {offsets = [0, 32], sizes = [64, 32], strides = [1, 1]} : vector<64x128xf32> to vector<64x32xf32>
    %cst_13 = arith.constant dense<0.000000e+00> : vector<64xf32>
    %30 = vector.multi_reduction <add>, %29, %cst_13 [1] : vector<64x32xf32> to vector<64xf32>
    %31 = vector.shape_cast %30 : vector<64xf32> to vector<64x1xf32>
    %cst_14 = arith.constant 3.125000e-02 : f32
    %32 = vector.broadcast %cst_14 : f32 to vector<64x1xf32>
    %33 = arith.mulf %31, %32 : vector<64x1xf32>
    %34 = vector.broadcast %33 : vector<64x1xf32> to vector<64x32xf32>
    %35 = arith.subf %29, %34 : vector<64x32xf32>
    %36 = arith.mulf %35, %35 : vector<64x32xf32>
    %cst_15 = arith.constant dense<0.000000e+00> : vector<64xf32>
    %37 = vector.multi_reduction <add>, %36, %cst_15 [1] : vector<64x32xf32> to vector<64xf32>
    %38 = vector.shape_cast %37 : vector<64xf32> to vector<64x1xf32>
    %cst_16 = arith.constant 3.125000e-02 : f32
    %39 = vector.broadcast %cst_16 : f32 to vector<64x1xf32>
    %40 = arith.mulf %38, %39 : vector<64x1xf32>
    %cst_17 = arith.constant 9.99999974E-6 : f32
    %41 = vector.broadcast %cst_17 : f32 to vector<64x1xf32>
    %42 = arith.addf %40, %41 : vector<64x1xf32>
    %43 = math.rsqrt %42 : vector<64x1xf32>
    %44 = vector.broadcast %43 : vector<64x1xf32> to vector<64x32xf32>
    %45 = arith.mulf %35, %44 : vector<64x32xf32>
    %46 = arith.mulf %45, %6 : vector<64x32xf32>
    %47 = arith.addf %46, %9 : vector<64x32xf32>
    %48 = tpu.concatenate %28, %47 in 1 : vector<64x32xf32>, vector<64x32xf32> -> vector<64x64xf32>
    %49 = vector.shape_cast %48 : vector<64x64xf32> to vector<8x8x64xf32>
    %c0_18 = arith.constant 0 : index
    %c0_19 = arith.constant 0 : index
    %c0_20 = arith.constant 0 : index
    %c0_21 = arith.constant 0 : index
    %50 = vector.load %arg6[%c0_18, %c0_19, %c0_20, %c0_21] : memref<8x2x8x64xf32, #tpu.memory_space<vmem>>, vector<8x1x8x64xf32>
    %51 = vector.shape_cast %50 : vector<8x1x8x64xf32> to vector<8x8x64xf32>
    %52 = vector.shape_cast %49 : vector<8x8x64xf32> to vector<8x1x8x64xf32>
    tpu.vector_store %arg6[%c0_18, %c0_19, %c0_20, %c0_21], %52 {strides = array<i32>} : memref<8x2x8x64xf32, #tpu.memory_space<vmem>>, vector<8x1x8x64xf32>,
    %53 = vector.extract_strided_slice %3 {offsets = [0, 64], sizes = [64, 32], strides = [1, 1]} : vector<64x128xf32> to vector<64x32xf32>
    %cst_22 = arith.constant dense<0.000000e+00> : vector<64xf32>
    %54 = vector.multi_reduction <add>, %53, %cst_22 [1] : vector<64x32xf32> to vector<64xf32>
    %55 = vector.shape_cast %54 : vector<64xf32> to vector<64x1xf32>
    %cst_23 = arith.constant 3.125000e-02 : f32
    %56 = vector.broadcast %cst_23 : f32 to vector<64x1xf32>
    %57 = arith.mulf %55, %56 : vector<64x1xf32>
    %58 = vector.broadcast %57 : vector<64x1xf32> to vector<64x32xf32>
    %59 = arith.subf %53, %58 : vector<64x32xf32>
    %60 = arith.mulf %59, %59 : vector<64x32xf32>
    %cst_24 = arith.constant dense<0.000000e+00> : vector<64xf32>
    %61 = vector.multi_reduction <add>, %60, %cst_24 [1] : vector<64x32xf32> to vector<64xf32>
    %62 = vector.shape_cast %61 : vector<64xf32> to vector<64x1xf32>
    %cst_25 = arith.constant 3.125000e-02 : f32
    %63 = vector.broadcast %cst_25 : f32 to vector<64x1xf32>
    %64 = arith.mulf %62, %63 : vector<64x1xf32>
    %cst_26 = arith.constant 9.99999974E-6 : f32
    %65 = vector.broadcast %cst_26 : f32 to vector<64x1xf32>
    %66 = arith.addf %64, %65 : vector<64x1xf32>
    %67 = math.rsqrt %66 : vector<64x1xf32>
    %68 = vector.broadcast %67 : vector<64x1xf32> to vector<64x32xf32>
    %69 = arith.mulf %59, %68 : vector<64x32xf32>
    %70 = arith.mulf %69, %6 : vector<64x32xf32>
    %71 = arith.addf %70, %9 : vector<64x32xf32>
    %72 = vector.extract_strided_slice %3 {offsets = [0, 96], sizes = [64, 32], strides = [1, 1]} : vector<64x128xf32> to vector<64x32xf32>
    %cst_27 = arith.constant dense<0.000000e+00> : vector<64xf32>
    %73 = vector.multi_reduction <add>, %72, %cst_27 [1] : vector<64x32xf32> to vector<64xf32>
    %74 = vector.shape_cast %73 : vector<64xf32> to vector<64x1xf32>
    %cst_28 = arith.constant 3.125000e-02 : f32
    %75 = vector.broadcast %cst_28 : f32 to vector<64x1xf32>
    %76 = arith.mulf %74, %75 : vector<64x1xf32>
    %77 = vector.broadcast %76 : vector<64x1xf32> to vector<64x32xf32>
    %78 = arith.subf %72, %77 : vector<64x32xf32>
    %79 = arith.mulf %78, %78 : vector<64x32xf32>
    %cst_29 = arith.constant dense<0.000000e+00> : vector<64xf32>
    %80 = vector.multi_reduction <add>, %79, %cst_29 [1] : vector<64x32xf32> to vector<64xf32>
    %81 = vector.shape_cast %80 : vector<64xf32> to vector<64x1xf32>
    %cst_30 = arith.constant 3.125000e-02 : f32
    %82 = vector.broadcast %cst_30 : f32 to vector<64x1xf32>
    %83 = arith.mulf %81, %82 : vector<64x1xf32>
    %cst_31 = arith.constant 9.99999974E-6 : f32
    %84 = vector.broadcast %cst_31 : f32 to vector<64x1xf32>
    %85 = arith.addf %83, %84 : vector<64x1xf32>
    %86 = math.rsqrt %85 : vector<64x1xf32>
    %87 = vector.broadcast %86 : vector<64x1xf32> to vector<64x32xf32>
    %88 = arith.mulf %78, %87 : vector<64x32xf32>
    %89 = arith.mulf %88, %6 : vector<64x32xf32>
    %90 = arith.addf %89, %9 : vector<64x32xf32>
    %91 = tpu.concatenate %71, %90 in 1 : vector<64x32xf32>, vector<64x32xf32> -> vector<64x64xf32>
    %92 = vector.shape_cast %91 : vector<64x64xf32> to vector<8x8x64xf32>
    %c0_32 = arith.constant 0 : index
    %c1 = arith.constant 1 : index
    %c0_33 = arith.constant 0 : index
    %c0_34 = arith.constant 0 : index
    %93 = vector.load %arg6[%c0_32, %c1, %c0_33, %c0_34] : memref<8x2x8x64xf32, #tpu.memory_space<vmem>>, vector<8x1x8x64xf32>
    %94 = vector.shape_cast %93 : vector<8x1x8x64xf32> to vector<8x8x64xf32>
    %95 = vector.shape_cast %92 : vector<8x8x64xf32> to vector<8x1x8x64xf32>
    tpu.vector_store %arg6[%c0_32, %c1, %c0_33, %c0_34], %95 {strides = array<i32>} : memref<8x2x8x64xf32, #tpu.memory_space<vmem>>, vector<8x1x8x64xf32>,
    return
  }
  func.func @transform_0(%arg0: i32, %arg1: i32) -> (i32, i32, i32) {
    %c0_i32 = arith.constant 0 : i32
    %c0_i32_0 = arith.constant 0 : i32
    return %arg0, %c0_i32, %arg1 : i32, i32, i32
  }
  func.func @transform_1(%arg0: i32, %arg1: i32) -> (i32, i32) {
    %c0_i32 = arith.constant 0 : i32
    %c0_i32_0 = arith.constant 0 : i32
    %c0_i32_1 = arith.constant 0 : i32
    return %c0_i32, %c0_i32_0 : i32, i32
  }
  func.func @transform_2(%arg0: i32, %arg1: i32) -> (i32, i32) {
    %c0_i32 = arith.constant 0 : i32
    %c0_i32_0 = arith.constant 0 : i32
    %c0_i32_1 = arith.constant 0 : i32
    return %c0_i32, %c0_i32_0 : i32, i32
  }
  func.func @transform_3(%arg0: i32, %arg1: i32) -> (i32, i32) {
    %c0_i32 = arith.constant 0 : i32
    %c0_i32_0 = arith.constant 0 : i32
    %c0_i32_1 = arith.constant 0 : i32
    return %c0_i32, %c0_i32_0 : i32, i32
  }
  func.func @transform_4(%arg0: i32, %arg1: i32) -> (i32, i32, i32, i32) {
    %c1_i32 = arith.constant 1 : i32
    %0 = arith.muli %arg0, %c1_i32 : i32
    %1 = arith.addi %0, %arg1 : i32
    %c0_i32 = arith.constant 0 : i32
    %c0_i32_0 = arith.constant 0 : i32
    %c0_i32_1 = arith.constant 0 : i32
    %c0_i32_2 = arith.constant 0 : i32
    return %1, %c0_i32, %c0_i32_0, %c0_i32_1 : i32, i32, i32, i32
  }
}

</mosaic_0001>

<bundles_post_ra>
// kernel: tpu_custom_call.1
= control target key start
LH: loop header
LB: loop body
LE: loop exit
PB: predicated region body
PF: predicated region fallthrough
CT: control target
= control target key end

     0   :  { %s3092_s0 = inlined_call_operand.hbm [shape: f32[2,64,64], index: 0, kind: input, shape index: {}]   ;;  %s3093_s1 = inlined_call_operand.hbm [shape: f32[64,128], index: 1, kind: input, shape index: {}]   ;;  %s3094_s2 = inlined_call_operand.vmem [shape: f32[1,32], index: 2, kind: input, shape index: {}]   ;;  %s3095_s3 = inlined_call_operand.vmem [shape: f32[1,32], index: 3, kind: input, shape index: {}]   ;;  %s3096_s4 = inlined_call_operand.hbm [shape: f32[16,2,8,64], index: 4, kind: output, shape index: {}]  }
   0x1   :  { %3107 = sst [smem:[#allocation19_spill]] %s3093_s1 }
   0x2   :  { %9 = vsyncpa [#allocation3], 0 }
   0x3   :  { %11 = vsyncpa [#allocation3 + $0x1], 0 }
   0x4   :  { %12 = vsyncpa [#allocation6], 0 }
   0x5   :  { %13 = vsyncpa [#allocation4], 0 }
   0x6   :  { %15 = vsyncpa [#allocation4 + $0x1], 0  ;;  %s1939_s15 = smov 0   ;;  %s1941_s16 = smov 0  }
   0x7   :  { %s1943_s17 = smov 0   ;;  %s1945_s18 = smov 0  }
   0x8   :  { %s1947_s19 = smov 0   ;;  %s1949_s20 = smov 0  }
   0x9 LB: > { %s1548_s21 = sadd.s32 4294967295, %s1904_s20   ;;  %s1549_s22 = sadd.s32 4294967294, %s1904_s20   ;;  %s1904_s20 = sphi %s1949_s20, %s21_s20   ;;  %s1900_s19 = sphi %s1947_s19, %s3163_s19   ;;  %s1896_s18 = sphi %s1945_s18, %s3162_s18   ;;  %s1892_s17 = sphi %s1943_s17, %s3161_s17   ;;  %s1888_s16 = sphi %s1941_s16, %s3160_s16   ;;  %s1884_s15 = sphi %s1939_s15, %s3159_s15  }
   0xa   : > { %p55_p0 = scmp.ne.s32.totalorder %s1888_s16, %s1884_s15  ;;  %p1973_p1 = scmp.eq.s32.totalorder %s1548_s21, 0 }
   0xb   : > { %p1977_p2 = scmp.eq.s32.totalorder %s1548_s21, 1  ;;  %p150_p3 = scmp.eq.s32.totalorder %s1549_s22, 1 }
   0xc   : > { %p1983_p4 = por %p1973_p1, %p55_p0  ;;  %p1550_p5 = scmp.ge.s32.totalorder %s1904_s20, 1 }
   0xd   : > { %p1988_p6 = por %p150_p3, %p55_p0  ;;  %p157_p7 = scmp.lt.s32.totalorder %s1904_s20, 3 }
   0xe   : > { %s3112_s1 = sld [smem:[#allocation19_spill]]  ;;  %s1906_s5 = smov [#allocation5]  }
   0xf   : > { %p1996_p8 = pnand %p1550_p5, %p157_p7  ;;  %s170_s6 = sshll.u32 %s1906_s5, 4  ;;  %s171_s6 = int_to_ptr.vmem [resolvable:$true] %s170_s6 }
  0x10   : > { %p1552_p11 = scmp.ge.s32.totalorder %s1904_s20, 2  ;;  %s3097_s7 = smov 128  }
  0x11   : > { %p1617_p9 = pneg %p1996_p8  ;;  %s3098_s8 = smov 8  }
  0x12   : > { %s33_s9 = sadd.s32 1, %s1900_s19  ;;  %s42_s10 = sadd.s32 1, %s1892_s17 }
  0x13   : > { %p1618_p10 = pnand %p1617_p9, %p1973_p1  ;;  %p35_p12 = scmp.ge.s32.totalorder %s33_s9, 2 }
  0x14   : > { %s168_s29 = sshll.u32 %s3112_s1, 4  ;;  %p49_p13 = scmp.ne.s32.totalorder %s1892_s17, %s1888_s16  ;;  %s169_s29 = int_to_ptr.hbm [resolvable:$true] %s168_s29 }
  0x15   : > { %1620 = dma.hbm_to_vmem [thread:$0]  (!%p1618_p10), %s169_s29, 1024, %s171_s6, [#allocation6], %s3097_s7, %s3097_s7, %s3098_s8  }
  0x16   : > { %p50_p0 = scmp.eq.s32.totalorder %s1904_s20, 0  ;;  %s3165_s9 = smov (%p35_p12, %s33_s9), 0 }
  0x17   : > { %3114 = sst [smem:[#allocation11_spill]] %s3165_s9  ;;  %p2021_p5 = por %p1977_p2, %p49_p13 }
  0x18   : > { %p2015_p3 = por %p50_p0, %p49_p13  ;;  %s37_s13 = ssub.s32 %s1900_s19, %s3165_s9 }
  0x19   : > { %p1630_p7 = scmp.lt.s32.totalorder %s1904_s20, 2  ;;  %p40_p9 = scmp.eq.s32.totalorder %s37_s13, 0 }
  0x1a   : > { %s190_s14 = sand.u32 1, %s1892_s17   ;;  %s1582_s27 = sshll.u32 %s1900_s19, 6 }
  0x1b   : > { %s1553_s21 = sshll.u32 %s190_s14, 6  ;;  %s200_s5 = scalar_lea.hbm %s3092_s0, %s1582_s27 }
  0x1c   : > { %s2030_s22 = scalar_select %p40_p9, %s1892_s17, %s42_s10  }
  0x1d   : > { %s194_s6 = scalar_lea.vmem [#allocation2], %s1553_s21  ;;  %s201_s24 = sshll.u32 %s200_s5, 4  ;;  %s202_s24 = int_to_ptr.hbm [resolvable:$true] %s201_s24 }
  0x1e   : > { %s203_s7 = sshll.u32 %s194_s6, 4  ;;  %p1622_p2 = pnand %p1630_p7, %p2015_p3  ;;  %s204_s7 = int_to_ptr.vmem [resolvable:$true] %s203_s7 }
  0x1f   : > { %s191_s8 = scalar_lea.sflag [#allocation3], %s190_s14  ;;  %s3117_s1 = smov 8  }
  0x20   : > { %s3118_s9 = smov 128   ;;  %215 = sbr.rel (%p1996_p8) target bundleno = 1243 (0x4db), region = 36 }
  0x21   : > { %1624 = dma.hbm_to_vmem [thread:$0]  (!%p1622_p2), %s202_s24, 1024, %s204_s7, %s191_s8, %s3118_s9, %s3118_s9, %s3117_s1  }
  0x25   : > { %s2044_s10 = sand.u32 1, %s1888_s16  }
  0x26   : > { %s1557_s13 = sshll.u32 %s2044_s10, 6  ;;  %s218_s21 = scalar_lea.sflag [#allocation3], %s2044_s10 }
  0x27   : > { %s2048_s27 = scalar_lea.vmem [#allocation2], %s1557_s13 }
  0x28   : > { %1871 = dma.done.wait (%p1983_p4), %s218_s21, 1024  }
  0x29   : > { %1873 = vsyncadd (%p1983_p4), %s218_s21, 4294966272 }
  0x2a   : > { %1875 = dma.done.wait (%p1973_p1), [#allocation6], 1024  }
  0x2b   : > { %1877 = vsyncadd (%p1973_p1), [#allocation6], 4294966272  ;;  %v254_v0 = vld [vmem:[%s2048_s27] sm:$0xff]  ;;  %v255_v1 = vld [vmem:[%s2048_s27 + $0x8] sm:$0xff]  ;;  %vm302_vm0 = vcmask 523264   ;;  %s1909_s7 = smov 32  }
  0x2c   : > { %270 = vxpose.xlu0.b32.start [1/8] (short) (narrow) %v254_v0, 64  ;;  %v256_v2 = vld [vmem:[%s2048_s27 + $0x10] sm:$0xff]  ;;  %v257_v3 = vld [vmem:[%s2048_s27 + $0x18] sm:$0xff]  ;;  %v267_v6 = vld [vmem:[#allocation5 + $0x28] sm:$0xff]  ;;  %s1910_s8 = smov 64   ;;  %s1911_s9 = smov 96  }
  0x2d   : > { %v269_v4 = vld [vmem:[#allocation5 + $0x38] sm:$0xff]  ;;  %v268_v5 = vld [vmem:[#allocation5 + $0x30] sm:$0xff]  ;;  %v266_v7 = vld [vmem:[#allocation5 + $0x20] sm:$0xff]  ;;  %vm376_vm1 = vcmask 261120   ;;  %s1559_s11 = sshll.u32 %s2044_s10, 7  ;;  %s1584_s24 = sshll.u32 %s1896_s18, 7 }
  0x2e   : > { %335 = vmatpush.msra.mxu0 %v269_v4  ;;  %1585 = vmatpush.msra.mxu1 %v269_v4  ;;  %v258_v8 = vld [vmem:[%s2048_s27 + $0x20] sm:$0xff]  ;;  %v265_v9 = vld [vmem:[#allocation5 + $0x18] sm:$0xff]  ;;  %v264_v10 = vld [vmem:[#allocation5 + $0x10] sm:$0xff]  ;;  %s2629_s14 = scalar_lea.vmem [#allocation7], %s1559_s11  ;;  %s1437_s18 = scalar_lea.sflag [#allocation4], %s2044_s10 }
  0x2f   : > { %1586 = vmatpush.msra.mxu2 %v269_v4  ;;  %1587 = vmatpush.msra.mxu3 %v269_v4  ;;  %v263_v11 = vld [vmem:[#allocation5 + $0x8] sm:$0xff]  ;;  %v262_v12 = vld [vmem:[#allocation5] sm:$0xff]  ;;  %v260_v14 = vld [vmem:[%s2048_s27 + $0x30] sm:$0xff]  ;;  %s1451_s1 = sshll.u32 %s2629_s14, 4  ;;  %s1452_s1 = int_to_ptr.vmem [resolvable:$true] %s1451_s1 }
  0x30   : > { %336 = vmatpush.msra.mxu0 %v268_v5  ;;  %1588 = vmatpush.msra.mxu1 %v268_v5  ;;  %v259_v13 = vld [vmem:[%s2048_s27 + $0x28] sm:$0xff]  ;;  %v261_v15 = vld [vmem:[%s2048_s27 + $0x38] sm:$0xff]  ;;  %v2072_v19 = vld [vmem:[%s3095_s3] ss:$0 sm:$0xff]  ;;  %s1450_s27 = scalar_lea.hbm %s3096_s4, %s1584_s24 }
  0x31   : > { %1589 = vmatpush.msra.mxu2 %v268_v5  ;;  %1590 = vmatpush.msra.mxu3 %v268_v5  ;;  %v2077_v20 = vld [vmem:[%s3094_s2] ss:$0 sm:$0xff]  ;;  %s1453_s23 = sshll.u32 %s1450_s27, 4  ;;  %s1454_s23 = int_to_ptr.hbm [resolvable:$true] %s1453_s23 }
  0x32   : > { %337 = vmatpush.msra.mxu0 %v267_v6  ;;  %1591 = vmatpush.msra.mxu1 %v267_v6  ;;  %s1832_s25 = sshra.s32 %s1454_s23, 4  ;;  %s1833_s25 = int_to_ptr.hbm [resolvable:$true] %s1832_s25 }
  0x33   : > { %1592 = vmatpush.msra.mxu2 %v267_v6  ;;  %1593 = vmatpush.msra.mxu3 %v267_v6  ;;  %s1834_s30 = scalar_lea.hbm %s1833_s25, 128  ;;  %p1839_p10 = scmp.lt.s32.totalorder %s1833_s25, %s3096_s4 }
  0x34   : > { %271 = vxpose.xlu0.b32.cont [2/8] (short) (narrow) %v255_v1, 64  ;;  %338 = vmatpush.msra.mxu0 %v266_v7  ;;  %p1835_p1 = scmp.ne.s32.totalorder %s1833_s25, %s1834_s30 }
  0x35   : > { %1594 = vmatpush.msra.mxu1 %v266_v7  ;;  %1595 = vmatpush.msra.mxu2 %v266_v7 }
  0x36   : > { %339 = vmatpush.msra.mxu0 %v265_v9  ;;  %1596 = vmatpush.msra.mxu3 %v266_v7  ;;  %p1836_p4 = pnand %p1835_p1, %p2021_p5 }
  0x37   : > { %1597 = vmatpush.msra.mxu1 %v265_v9  ;;  %1598 = vmatpush.msra.mxu2 %v265_v9 }
  0x38   : > { %340 = vmatpush.msra.mxu0 %v264_v10  ;;  %1599 = vmatpush.msra.mxu3 %v265_v9  ;;  %p1837_p8 = pneg %p1836_p4 }
  0x39   : > { %1600 = vmatpush.msra.mxu1 %v264_v10  ;;  %1601 = vmatpush.msra.mxu2 %v264_v10 }
  0x3a   : > { %341 = vmatpush.msra.mxu0 %v263_v11  ;;  %1602 = vmatpush.msra.mxu3 %v264_v10 }
  0x3b   : > { %1603 = vmatpush.msra.mxu1 %v263_v11  ;;  %1604 = vmatpush.msra.mxu2 %v263_v11 }
  0x3c   : > { %272 = vxpose.xlu0.b32.cont [3/8] (short) (narrow) %v256_v2, 64  ;;  %342 = vmatpush.msra.mxu0 %v262_v12 }
  0x3d   : > { %1606 = vmatpush.msra.mxu1 %v262_v12  ;;  %1607 = vmatpush.msra.mxu2 %v262_v12 }
  0x3e   : > { %1605 = vmatpush.msra.mxu3 %v263_v11  ;;  %820 = vrot.lane.b32.xlu1 %v2072_v19, %s1909_s7 }
  0x3f   : > { %809 = vrot.lane.b32.xlu2 %v2077_v20, %s1909_s7 }
  0x40   : > { %1608 = vmatpush.msra.mxu3 %v262_v12 }
  0x44   : > { %273 = vxpose.xlu0.b32.cont [4/8] (short) (narrow) %v257_v3, 64 }
  0x46   : > { %1333 = vrot.lane.b32.xlu1 %v2077_v20, %s1911_s9 }
  0x47   : > { %1079 = vrot.lane.b32.xlu2 %v2077_v20, %s1910_s8 }
  0x4c   : > { %274 = vxpose.xlu0.b32.cont [5/8] (short) (narrow) %v258_v8, 64 }
  0x4f   : > { %1344 = vrot.lane.b32.xlu2 %v2072_v19, %s1911_s9 }
  0x54   : > { %275 = vxpose.xlu0.b32.cont [6/8] (short) (narrow) %v259_v13, 64 }
  0x5c   : > { %276 = vxpose.xlu0.b32.cont [7/8] (short) (narrow) %v260_v14, 64 }
  0x64   : > { %277 = vxpose.xlu0.b32.end [8/8] (short) (narrow) %v261_v15, 64 }
  0x99   : > { %v2180_v58 = vpop.permute.xlu2 %809 }
  0xa1   : > { %v2186_v59 = vpop.permute.xlu2 %1079 }
  0xa9   : > { %v2188_v60 = vpop.permute.xlu2 %1344 }
  0xb0   : > { %v2160_v44 = vpop.permute.xlu1 %820 }
  0xb8   : > { %v2164_v45 = vpop.permute.xlu1 %1333 }
  0xd0   : > { %v286_v16 = vpop.trf.xlu0 }
  0xd1   : > { %1560 = vmatmul.msk.f32.vlgmr.msra.gmra.mxu0 %vm302_vm0, %v286_v16 }
  0xd2   : > { %1090 = vrot.lane.b32.xlu0 %v2072_v19, %s1910_s8 }
  0xd8   : > { %v287_v17 = vpop.trf.xlu0 }
  0xd9   : > { %1561 = vmatmul.msk.f32.gmra.mxu0 %vm302_vm0, %v287_v17 }
  0xe0   : > { %v288_v18 = vpop.trf.xlu0 }
  0xe1   : > { %1562 = vmatmul.msk.f32.vlgmr.msra.gmra.mxu1 %vm302_vm0, %v288_v18 }
  0xe8   : > { %v289_v21 = vpop.trf.xlu0 }
  0xe9   : > { %1563 = vmatmul.msk.f32.gmra.mxu1 %vm302_vm0, %v289_v21 }
  0xf0   : > { %v290_v22 = vpop.trf.xlu0 }
  0xf1   : > { %1564 = vmatmul.msk.f32.vlgmr.msra.gmra.mxu2 %vm302_vm0, %v290_v22 }
  0xf8   : > { %v291_v23 = vpop.trf.xlu0 }
  0xf9   : > { %1565 = vmatmul.msk.f32.gmra.mxu2 %vm302_vm0, %v291_v23 }
 0x100   : > { %v292_v24 = vpop.trf.xlu0 }
 0x101   : > { %1566 = vmatmul.msk.f32.vlgmr.msra.gmra.mxu3 %vm302_vm0, %v292_v24 }
 0x108   : > { %v293_v33 = vpop.trf.xlu0 }
 0x109   : > { %1567 = vmatmul.msk.f32.gmra.mxu3 %vm302_vm0, %v293_v33 }
 0x144   : > { %v2144_v36 = vpop.permute.xlu0 %1090 }
 0x14e   : > { %v2095_v25 = vpop.f32.mrf.mxu0 }
 0x14f   : > { %577 = vrot.lane.b32.xlu0 %v2095_v25, %s1911_s9  ;;  %v377_v26 = vsel %vm376_vm1, %v2095_v25, 0.0 }
 0x150   : > { %378 = vadd.xlane.f32.xlu1 %v377_v26 }
 0x156   : > { %v2101_v27 = vpop.f32.mrf.mxu0 }
 0x157   : > { %847 = vrot.lane.b32.xlu0 %v2095_v25, %s1910_s8  ;;  %849 = vrot.lane.b32.xlu2 %v2101_v27, %s1910_s8  ;;  %v380_v35 = vsel %vm376_vm1, %v2101_v27, 0.0 }
 0x15e   : > { %v2107_v28 = vpop.f32.mrf.mxu1 }
 0x15f   : > { %1101 = vrot.lane.b32.xlu0 %v2095_v25, %s1909_s7  ;;  %581 = vrot.lane.b32.xlu2 %v2107_v28, %s1911_s9  ;;  %v383_v34 = vsel %vm376_vm1, %v2107_v28, 0.0 }
 0x166   : > { %v2119_v29 = vpop.f32.mrf.mxu1 }
 0x167   : > { %1105 = vrot.lane.b32.xlu2 %v2107_v28, %s1909_s7  ;;  %851 = vrot.lane.b32.xlu0 %v2107_v28, %s1910_s8  ;;  %v386_v40 = vsel %vm376_vm1, %v2119_v29, 0.0 }
 0x169   : > { %579 = vrot.lane.b32.xlu1 %v2101_v27, %s1911_s9 }
 0x16f   : > { %1107 = vrot.lane.b32.xlu0 %v2119_v29, %s1909_s7 }
 0x171   : > { %1103 = vrot.lane.b32.xlu1 %v2101_v27, %s1909_s7 }
 0x174   : > { %v2125_v30 = vpop.f32.mrf.mxu2 }
 0x175   : > { %v389_v43 = vsel %vm376_vm1, %v2125_v30, 0.0 }
 0x17c   : > { %v2127_v31 = vpop.f32.mrf.mxu2 }
 0x17d   : > { %857 = vrot.lane.b32.xlu0 %v2127_v31, %s1910_s8  ;;  %v392_v50 = vsel %vm376_vm1, %v2127_v31, 0.0 }
 0x184   : > { %v2131_v32 = vpop.f32.mrf.mxu3 }
 0x185   : > { %1113 = vrot.lane.b32.xlu0 %v2131_v32, %s1909_s7  ;;  %v395_v57 = vsel %vm376_vm1, %v2131_v32, 0.0 }
 0x18c   : > { %v2176_v56 = vpop.f32.mrf.mxu3 }
 0x18d   : > { %v398_v1 = vsel %vm376_vm1, %v2176_v56, 0.0 }
 0x190   : > { %384 = vadd.xlane.f32.xlu2 %v383_v34 }
 0x19b   : > { %381 = vadd.xlane.f32.xlu1 %v380_v35 }
 0x1a8   : > { %583 = vrot.lane.b32.xlu2 %v2119_v29, %s1911_s9 }
 0x1b1   : > { %v850_v61 = vpop.permute.xlu2 %849 }
 0x1b2   : > { %v874_v34 = vsel %vm376_vm1, %v850_v61, 0.0 }
 0x1b4   : > { %853 = vrot.lane.b32.xlu1 %v2119_v29, %s1910_s8 }
 0x1b9   : > { %v582_v63 = vpop.permute.xlu2 %581 }
 0x1bc   : > { %585 = vrot.lane.b32.xlu1 %v2125_v30, %s1911_s9 }
 0x1c1   : > { %v578_v37 = vpop.permute.xlu0 %577  ;;  %v1106_v2 = vpop.permute.xlu2 %1105 }
 0x1c2   : > { %v601_v13 = vsel %vm376_vm1, %v578_v37, 0.0  ;;  %v1131_v26 = vsel %vm376_vm1, %v1106_v2, 0.0 }
 0x1c3   : > { %v379_v46 = vpop.xlane.xlu1 %378 }
 0x1c4   : > { %1109 = vrot.lane.b32.xlu1 %v2125_v30, %s1909_s7  ;;  %v401_v9 = vmul.f32 0.03125, %v379_v46 }
 0x1c6   : > { %v2208_v12 = vsub.f32 %v2095_v25, %v401_v9 }
 0x1c8   : > { %v417_v16 = vmul.f32 %v2208_v12, %v2208_v12 }
 0x1c9   : > { %v848_v38 = vpop.permute.xlu0 %847 }
 0x1ca   : > { %v871_v39 = vsel %vm376_vm1, %v848_v38, 0.0  ;;  %v425_v22 = vsel %vm376_vm1, %v417_v16, 0.0 }
 0x1cb   : > { %872 = vadd.xlane.f32.xlu0 %v871_v39 }
 0x1d1   : > { %387 = vadd.xlane.f32.xlu2 %v386_v40  ;;  %v1102_v41 = vpop.permute.xlu0 %1101 }
 0x1d2   : > { %v1125_v42 = vsel %vm376_vm1, %v1102_v41, 0.0 }
 0x1d3   : > { %1126 = vadd.xlane.f32.xlu0 %v1125_v42 }
 0x1d9   : > { %v852_v51 = vpop.permute.xlu0 %851 }
 0x1da   : > { %v877_v18 = vsel %vm376_vm1, %v852_v51, 0.0 }
 0x1db   : > { %v580_v47 = vpop.permute.xlu1 %579 }
 0x1dc   : > { %v604_v6 = vsel %vm376_vm1, %v580_v47, 0.0 }
 0x1e1   : > { %v1108_v54 = vpop.permute.xlu0 %1107 }
 0x1e2   : > { %v1134_v55 = vsel %vm376_vm1, %v1108_v54, 0.0 }
 0x1e3   : > { %v2170_v48 = vpop.permute.xlu1 %1103 }
 0x1e4   : > { %v1128_v40 = vsel %vm376_vm1, %v2170_v48, 0.0 }
 0x1e9   : > { %855 = vrot.lane.b32.xlu2 %v2125_v30, %s1910_s8 }
 0x1ee   : > { %390 = vadd.xlane.f32.xlu1 %v389_v43 }
 0x1ef   : > { %v858_v15 = vpop.permute.xlu0 %857 }
 0x1f1   : > { %587 = vrot.lane.b32.xlu2 %v2127_v31, %s1911_s9 }
 0x1f7   : > { %v1114_v24 = vpop.permute.xlu0 %1113 }
 0x1f8   : > { %v1143_v33 = vsel %vm376_vm1, %v1114_v24, 0.0 }
 0x1f9   : > { %1111 = vrot.lane.b32.xlu2 %v2127_v31, %s1909_s7 }
 0x203   : > { %v385_v7 = vpop.xlane.xlu2 %384 }
 0x204   : > { %v403_v42 = vmul.f32 0.03125, %v385_v7 }
 0x206   : > { %v2229_v47 = vsub.f32 %v2107_v28, %v403_v42 }
 0x207   : > { %589 = vrot.lane.b32.xlu1 %v2131_v32, %s1911_s9 }
 0x20b   : > { %v584_v14 = vpop.permute.xlu2 %583 }
 0x20c   : > { %v610_v39 = vsel %vm376_vm1, %v584_v14, 0.0 }
 0x20e   : > { %v382_v49 = vpop.xlane.xlu1 %381 }
 0x20f   : > { %859 = vrot.lane.b32.xlu1 %v2131_v32, %s1910_s8  ;;  %v402_v3 = vmul.f32 0.03125, %v382_v49  ;;  %v607_v49 = vsel %vm376_vm1, %v582_v63, 0.0 }
 0x211   : > { %v2199_v5 = vsub.f32 %v2101_v27, %v402_v3 }
 0x213   : > { %v418_v8 = vmul.f32 %v2199_v5, %v2199_v5 }
 0x215   : > { %v428_v11 = vsel %vm376_vm1, %v418_v8, 0.0 }
 0x222   : > { %393 = vadd.xlane.f32.xlu2 %v392_v50  ;;  %v419_v50 = vmul.f32 %v2229_v47, %v2229_v47 }
 0x226   : > { %v854_v52 = vpop.permute.xlu1 %853 }
 0x227   : > { %v880_v53 = vsel %vm376_vm1, %v854_v52, 0.0  ;;  %v431_v52 = vsel %vm376_vm1, %v419_v50, 0.0 }
 0x228   : > { %881 = vadd.xlane.f32.xlu0 %v880_v53  ;;  %v886_v53 = vsel %vm376_vm1, %v858_v15, 0.0 }
 0x22e   : > { %v586_v62 = vpop.permute.xlu1 %585 }
 0x230   : > { %1135 = vadd.xlane.f32.xlu0 %v1134_v55  ;;  %v613_v55 = vsel %vm376_vm1, %v586_v62, 0.0 }
 0x236   : > { %v2192_v0 = vpop.permute.xlu1 %1109 }
 0x237   : > { %v1137_v7 = vsel %vm376_vm1, %v2192_v0, 0.0 }
 0x239   : > { %396 = vadd.xlane.f32.xlu1 %v395_v57 }
 0x23a   : > { %591 = vrot.lane.b32.xlu2 %v2176_v56, %s1911_s9 }
 0x242   : > { %861 = vrot.lane.b32.xlu2 %v2176_v56, %s1910_s8 }
 0x244   : > { %v388_v23 = vpop.xlane.xlu2 %387 }
 0x245   : > { %v404_v35 = vmul.f32 0.03125, %v388_v23 }
 0x247   : > { %v2220_v38 = vsub.f32 %v2119_v29, %v404_v35 }
 0x249   : > { %v420_v41 = vmul.f32 %v2220_v38, %v2220_v38 }
 0x24b   : > { %v434_v46 = vsel %vm376_vm1, %v420_v41, 0.0  ;;  %v873_v41 = vpop.xlane.xlu0 %872 }
 0x24c   : > { %v856_v37 = vpop.permute.xlu2 %855 }
 0x252   : > { %1115 = vrot.lane.b32.xlu1 %v2176_v56, %s1909_s7 }
 0x254   : > { %v588_v43 = vpop.permute.xlu2 %587 }
 0x255   : > { %v616_v48 = vsel %vm376_vm1, %v588_v43, 0.0 }
 0x25c   : > { %v1112_v51 = vpop.permute.xlu2 %1111 }
 0x25d   : > { %v1140_v63 = vsel %vm376_vm1, %v1112_v51, 0.0 }
 0x261   : > { %v2196_v4 = vpop.xlane.xlu1 %390 }
 0x262   : > { %v405_v3 = vmul.f32 0.03125, %v2196_v4 }
 0x264   : > { %v2248_v62 = vsub.f32 %v2125_v30, %v405_v3 }
 0x266   : > { %v421_v8 = vmul.f32 %v2248_v62, %v2248_v62 }
 0x26b   : > { %399 = vadd.xlane.f32.xlu2 %v398_v1  ;;  %v883_v1 = vsel %vm376_vm1, %v856_v37, 0.0 }
 0x273   : > { %605 = vadd.xlane.f32.xlu2 %v604_v6 }
 0x279   : > { %v2204_v10 = vpop.permute.xlu1 %589 }
 0x27a   : > { %v619_v16 = vsel %vm376_vm1, %v2204_v10, 0.0 }
 0x27b   : > { %429 = vadd.xlane.f32.xlu2 %v428_v11 }
 0x27c   : > { %602 = vadd.xlane.f32.xlu1 %v601_v13  ;;  %v437_v13 = vsel %vm376_vm1, %v421_v8, 0.0 }
 0x281   : > { %v860_v17 = vpop.permute.xlu1 %859 }
 0x282   : > { %v889_v21 = vsel %vm376_vm1, %v860_v17, 0.0 }
 0x283   : > { %878 = vadd.xlane.f32.xlu2 %v877_v18  ;;  %890 = vadd.xlane.f32.xlu0 %v889_v21 }
 0x284   : > { %426 = vadd.xlane.f32.xlu1 %v425_v22 }
 0x28b   : > { %1132 = vadd.xlane.f32.xlu2 %v1131_v26  ;;  %1144 = vadd.xlane.f32.xlu0 %v1143_v33 }
 0x28c   : > { %875 = vadd.xlane.f32.xlu1 %v874_v34 }
 0x293   : > { %611 = vadd.xlane.f32.xlu2 %v610_v39 }
 0x294   : > { %1129 = vadd.xlane.f32.xlu1 %v1128_v40 }
 0x295   : > { %v394_v54 = vpop.xlane.xlu2 %393 }
 0x296   : > { %v406_v57 = vmul.f32 0.03125, %v394_v54 }
 0x298   : > { %v2239_v61 = vsub.f32 %v2127_v31, %v406_v57 }
 0x29a   : > { %v422_v2 = vmul.f32 %v2239_v61, %v2239_v61 }
 0x29b   : > { %435 = vadd.xlane.f32.xlu2 %v434_v46 }
 0x29c   : > { %608 = vadd.xlane.f32.xlu1 %v607_v49  ;;  %v440_v6 = vsel %vm376_vm1, %v422_v2, 0.0  ;;  %v895_v49 = vmul.f32 0.03125, %v873_v41 }
 0x29d   : > { %v592_v9 = vpop.permute.xlu2 %591 }
 0x29e   : > { %v622_v11 = vsel %vm376_vm1, %v592_v9, 0.0 }
 0x2a3   : > { %617 = vadd.xlane.f32.xlu2 %v616_v48 }
 0x2a4   : > { %432 = vadd.xlane.f32.xlu1 %v431_v52  ;;  %v2286_v52 = vsub.f32 %v2095_v25, %v895_v49 }
 0x2a5   : > { %v862_v18 = vpop.permute.xlu2 %861 }
 0x2a6   : > { %v892_v21 = vsel %vm376_vm1, %v862_v18, 0.0  ;;  %v911_v57 = vmul.f32 %v2286_v52, %v2286_v52 }
 0x2ab   : > { %887 = vadd.xlane.f32.xlu2 %v886_v53  ;;  %v1127_v53 = vpop.xlane.xlu0 %1126 }
 0x2ac   : > { %614 = vadd.xlane.f32.xlu1 %v613_v55  ;;  %v397_v4 = vpop.xlane.xlu1 %396  ;;  %v1149_v54 = vmul.f32 0.03125, %v1127_v53 }
 0x2ad   : > { %v407_v14 = vmul.f32 0.03125, %v397_v4 }
 0x2af   : > { %v2257_v15 = vsub.f32 %v2131_v32, %v407_v14 }
 0x2b1   : > { %v423_v0 = vmul.f32 %v2257_v15, %v2257_v15 }
 0x2b3   : > { %1141 = vadd.xlane.f32.xlu2 %v1140_v63  ;;  %v443_v17 = vsel %vm376_vm1, %v423_v0, 0.0 }
 0x2b4   : > { %884 = vadd.xlane.f32.xlu1 %v883_v1  ;;  %v2295_v1 = vsub.f32 %v2095_v25, %v1149_v54 }
 0x2b6   : > { %v1165_v8 = vmul.f32 %v2295_v1, %v2295_v1 }
 0x2bb   : > { %441 = vadd.xlane.f32.xlu2 %v440_v6 }
 0x2bc   : > { %1138 = vadd.xlane.f32.xlu1 %v1137_v7 }
 0x2c3   : > { %623 = vadd.xlane.f32.xlu2 %v622_v11 }
 0x2c4   : > { %438 = vadd.xlane.f32.xlu1 %v437_v13  ;;  %v1116_v24 = vpop.permute.xlu1 %1115 }
 0x2c5   : > { %v1146_v33 = vsel %vm376_vm1, %v1116_v24, 0.0 }
 0x2cc   : > { %620 = vadd.xlane.f32.xlu1 %v619_v16 }
 0x2d4   : > { %444 = vadd.xlane.f32.xlu1 %v443_v17 }
 0x2dc   : > { %893 = vadd.xlane.f32.xlu1 %v892_v21 }
 0x2de   : > { %v400_v22 = vpop.xlane.xlu2 %399 }
 0x2df   : > { %v408_v23 = vmul.f32 0.03125, %v400_v22 }
 0x2e1   : > { %v2266_v26 = vsub.f32 %v2176_v56, %v408_v23 }
 0x2e3   : > { %3119 = vst [vmem:[#allocation12_spill] sm:$0xff] %v2266_v26  ;;  %v424_v10 = vmul.f32 %v2266_v26, %v2266_v26 }
 0x2e4   : > { %1147 = vadd.xlane.f32.xlu1 %v1146_v33 }
 0x2e5   : > { %v446_v34 = vsel %vm376_vm1, %v424_v10, 0.0 }
 0x2e6   : > { %v606_v35 = vpop.xlane.xlu2 %605  ;;  %447 = vadd.xlane.f32.xlu2 %v446_v34 }
 0x2e7   : > { %v626_v37 = vmul.f32 0.03125, %v606_v35 }
 0x2e9   : > { %v2273_v39 = vsub.f32 %v2101_v27, %v626_v37 }
 0x2eb   : > { %v642_v40 = vmul.f32 %v2273_v39, %v2273_v39 }
 0x2ed   : > { %659 = vrot.lane.b32.xlu0 %v642_v40, %s1911_s9 }
 0x2ee   : > { %v2278_v42 = vpop.xlane.xlu2 %429 }
 0x2ef   : > { %v603_v43 = vpop.xlane.xlu1 %602 }
 0x2f0   : > { %v625_v46 = vmul.f32 0.03125, %v603_v43 }
 0x2f2   : > { %v2281_v48 = vsub.f32 %v2095_v25, %v625_v46  ;;  %v882_v25 = vpop.xlane.xlu0 %881 }
 0x2f3   : > { %v898_v37 = vmul.f32 0.03125, %v882_v25 }
 0x2f4   : > { %v641_v55 = vmul.f32 %v2281_v48, %v2281_v48 }
 0x2f6   : > { %v879_v50 = vpop.xlane.xlu2 %878 }
 0x2f7   : > { %v2283_v51 = vpop.xlane.xlu1 %426  ;;  %v897_v7 = vmul.f32 0.03125, %v879_v50  ;;  %v2341_v50 = vsub.f32 %v2119_v29, %v898_v37 }
 0x2f9   : > { %v2307_v4 = vsub.f32 %v2107_v28, %v897_v7  ;;  %v914_v53 = vmul.f32 %v2341_v50, %v2341_v50 }
 0x2fa   : > { %v1136_v34 = vpop.xlane.xlu0 %1135 }
 0x2fb   : > { %v913_v18 = vmul.f32 %v2307_v4, %v2307_v4  ;;  %v1152_v40 = vmul.f32 0.03125, %v1136_v34 }
 0x2fd   : > { %657 = vrot.lane.b32.xlu1 %v641_v55, %s1911_s9 }
 0x2fe   : > { %v1133_v63 = vpop.xlane.xlu2 %1132  ;;  %927 = vrot.lane.b32.xlu2 %v911_v57, %s1910_s8 }
 0x2ff   : > { %v876_v2 = vpop.xlane.xlu1 %875  ;;  %v1151_v9 = vmul.f32 0.03125, %v1133_v63 }
 0x300   : > { %v896_v3 = vmul.f32 0.03125, %v876_v2 }
 0x301   : > { %v2310_v16 = vsub.f32 %v2107_v28, %v1151_v9 }
 0x302   : > { %v2298_v6 = vsub.f32 %v2101_v27, %v896_v3  ;;  %v891_v7 = vpop.xlane.xlu0 %890 }
 0x303   : > { %v1167_v22 = vmul.f32 %v2310_v16, %v2310_v16 }
 0x304   : > { %v912_v11 = vmul.f32 %v2298_v6, %v2298_v6 }
 0x305   : > { %1181 = vrot.lane.b32.xlu1 %v1165_v8, %s1909_s7 }
 0x306   : > { %v612_v13 = vpop.xlane.xlu2 %611  ;;  %929 = vrot.lane.b32.xlu0 %v912_v11, %s1910_s8 }
 0x307   : > { %v1130_v14 = vpop.xlane.xlu1 %1129  ;;  %v628_v21 = vmul.f32 0.03125, %v612_v13 }
 0x308   : > { %v1150_v0 = vmul.f32 0.03125, %v1130_v14 }
 0x309   : > { %v2327_v33 = vsub.f32 %v2119_v29, %v628_v21 }
 0x30a   : > { %v2313_v17 = vsub.f32 %v2101_v27, %v1150_v0 }
 0x30b   : > { %v644_v41 = vmul.f32 %v2327_v33, %v2327_v33 }
 0x30c   : > { %v1166_v23 = vmul.f32 %v2313_v17, %v2313_v17 }
 0x30d   : > { %931 = vrot.lane.b32.xlu1 %v913_v18, %s1910_s8 }
 0x30e   : > { %v2322_v24 = vpop.xlane.xlu2 %435  ;;  %1185 = vrot.lane.b32.xlu0 %v1167_v22, %s1909_s7  ;;  %1183 = vrot.lane.b32.xlu2 %v1166_v23, %s1909_s7 }
 0x30f   : > { %v609_v27 = vpop.xlane.xlu1 %608 }
 0x310   : > { %v627_v10 = vmul.f32 0.03125, %v609_v27 }
 0x312   : > { %v2330_v35 = vsub.f32 %v2107_v28, %v627_v10  ;;  %v2344_v28 = vsub.f32 %v2119_v29, %v1152_v40  ;;  %v1145_v10 = vpop.xlane.xlu0 %1144 }
 0x313   : > { %v1155_v37 = vmul.f32 0.03125, %v1145_v10 }
 0x314   : > { %v643_v43 = vmul.f32 %v2330_v35, %v2330_v35  ;;  %v1168_v54 = vmul.f32 %v2344_v28, %v2344_v28 }
 0x316   : > { %v618_v46 = vpop.xlane.xlu2 %617  ;;  %663 = vrot.lane.b32.xlu0 %v644_v41, %s1911_s9  ;;  %661 = vrot.lane.b32.xlu2 %v643_v43, %s1911_s9 }
 0x317   : > { %v2338_v49 = vpop.xlane.xlu1 %432  ;;  %v630_v40 = vmul.f32 0.03125, %v618_v46 }
 0x31e   : > { %v888_v55 = vpop.xlane.xlu2 %887  ;;  %933 = vrot.lane.b32.xlu0 %v914_v53, %s1910_s8  ;;  %1187 = vrot.lane.b32.xlu2 %v1168_v54, %s1909_s7  ;;  %v2387_v54 = vsub.f32 %v2131_v32, %v1155_v37 }
 0x31f   : > { %v615_v57 = vpop.xlane.xlu1 %614  ;;  %v900_v0 = vmul.f32 0.03125, %v888_v55 }
 0x320   : > { %v629_v63 = vmul.f32 0.03125, %v615_v57  ;;  %3121 = vst [vmem:[#allocation14_spill] sm:$0xff] %v2387_v54 }
 0x321   : > { %v2373_v23 = vsub.f32 %v2127_v31, %v900_v0 }
 0x322   : > { %v2353_v2 = vsub.f32 %v2125_v30, %v629_v63  ;;  %v1171_v63 = vmul.f32 %v2387_v54, %v2387_v54 }
 0x323   : > { %v916_v43 = vmul.f32 %v2373_v23, %v2373_v23 }
 0x324   : > { %v645_v29 = vmul.f32 %v2353_v2, %v2353_v2 }
 0x326   : > { %v1142_v3 = vpop.xlane.xlu2 %1141  ;;  %665 = vrot.lane.b32.xlu0 %v645_v29, %s1911_s9 }
 0x327   : > { %v1154_v8 = vmul.f32 0.03125, %v1142_v3  ;;  %v885_v9 = vpop.xlane.xlu1 %884 }
 0x328   : > { %v899_v11 = vmul.f32 0.03125, %v885_v9  ;;  %v901_v9 = vmul.f32 0.03125, %v891_v7 }
 0x329   : > { %v2359_v13 = vsub.f32 %v2127_v31, %v1154_v8 }
 0x32a   : > { %v2362_v25 = vsub.f32 %v2125_v30, %v899_v11 }
 0x32b   : > { %3120 = vst [vmem:[#allocation13_spill] sm:$0xff] %v2359_v13  ;;  %v1170_v14 = vmul.f32 %v2359_v13, %v2359_v13 }
 0x32c   : > { %v915_v18 = vmul.f32 %v2362_v25, %v2362_v25 }
 0x32e   : > { %1191 = vrot.lane.b32.xlu0 %v1170_v14, %s1909_s7  ;;  %935 = vrot.lane.b32.xlu2 %v915_v18, %s1910_s8  ;;  %v2370_v21 = vpop.xlane.xlu2 %441  ;;  %v2413_v18 = vsub.f32 %v2131_v32, %v901_v9 }
 0x32f   : > { %v1139_v22 = vpop.xlane.xlu1 %1138 }
 0x330   : > { %v1153_v27 = vmul.f32 0.03125, %v1139_v22  ;;  %3123 = vst [vmem:[#allocation16_spill] sm:$0xff] %v2413_v18  ;;  %v917_v22 = vmul.f32 %v2413_v18, %v2413_v18 }
 0x332   : > { %v2376_v34 = vsub.f32 %v2125_v30, %v1153_v27  ;;  %v2390_v30 = vsub.f32 %v2127_v31, %v630_v40 }
 0x334   : > { %v1169_v41 = vmul.f32 %v2376_v34, %v2376_v34  ;;  %v646_v57 = vmul.f32 %v2390_v30, %v2390_v30 }
 0x336   : > { %1189 = vrot.lane.b32.xlu1 %v1169_v41, %s1909_s7  ;;  %937 = vrot.lane.b32.xlu2 %v916_v43, %s1910_s8  ;;  %v624_v55 = vpop.xlane.xlu2 %623 }
 0x337   : > { %v2384_v53 = vpop.xlane.xlu1 %438  ;;  %v632_v46 = vmul.f32 0.03125, %v624_v55 }
 0x339   : > { %v2399_v3 = vsub.f32 %v2176_v56, %v632_v46 }
 0x33b   : > { %3122 = vst [vmem:[#allocation15_spill] sm:$0xff] %v2399_v3  ;;  %v648_v14 = vmul.f32 %v2399_v3, %v2399_v3 }
 0x33e   : > { %667 = vrot.lane.b32.xlu1 %v646_v57, %s1911_s9  ;;  %1193 = vrot.lane.b32.xlu2 %v1171_v63, %s1909_s7 }
 0x33f   : > { %v621_v29 = vpop.xlane.xlu1 %620 }
 0x340   : > { %v631_v8 = vmul.f32 0.03125, %v621_v29 }
 0x342   : > { %v2402_v31 = vsub.f32 %v2131_v32, %v631_v8 }
 0x344   : > { %v647_v11 = vmul.f32 %v2402_v31, %v2402_v31 }
 0x346   : > { %669 = vrot.lane.b32.xlu0 %v647_v11, %s1911_s9  ;;  %671 = vrot.lane.b32.xlu2 %v648_v14, %s1911_s9  ;;  %s1838_s9 = scalar_lea.hbm %s3096_s4, 256 }
 0x347   : > { %v2410_v0 = vpop.xlane.xlu1 %444  ;;  %p1840_p12 = scmp.lt.s32.totalorder %s1838_s9, %s1834_s30 }
 0x349   : > { %p1841_p13 = por %p1840_p12, %p1839_p10 }
 0x34b   : > { %p1842_p0 = pnand %p1841_p13, %p1837_p8 }
 0x34e   : > { %939 = vrot.lane.b32.xlu0 %v917_v22, %s1910_s8 }
 0x34f   : > { %v894_v7 = vpop.xlane.xlu1 %893 }
 0x350   : > { %v902_v27 = vmul.f32 0.03125, %v894_v7 }
 0x352   : > { %v2419_v10 = vsub.f32 %v2176_v56, %v902_v27 }
 0x354   : > { %3124 = vst [vmem:[#allocation17_spill] sm:$0xff] %v2419_v10  ;;  %v918_v37 = vmul.f32 %v2419_v10, %v2419_v10 }
 0x356   : > { %941 = vrot.lane.b32.xlu1 %v918_v37, %s1910_s8 }
 0x357   : > { %v1148_v40 = vpop.xlane.xlu1 %1147 }
 0x358   : > { %v1156_v41 = vmul.f32 0.03125, %v1148_v40 }
 0x359   : > { %v2429_v55 = vpop.xlane.xlu2 %447 }
 0x35a   : > { %v2425_v32 = vsub.f32 %v2176_v56, %v1156_v41 }
 0x35c   : > { %3125 = vst [vmem:[#allocation18_spill] sm:$0xff] %v2425_v32  ;;  %v1172_v43 = vmul.f32 %v2425_v32, %v2425_v32 }
 0x35e   : > { %1195 = vrot.lane.b32.xlu1 %v1172_v43, %s1909_s7 }
 0x35f   : > { %v660_v63 = vpop.permute.xlu0 %659 }
 0x360   : > { %v684_v9 = vsel %vm376_vm1, %v660_v63, 0.0 }
 0x361   : > { %v928_v46 = vpop.permute.xlu2 %927 }
 0x362   : > { %v951_v57 = vsel %vm376_vm1, %v928_v46, 0.0 }
 0x369   : > { %v1184_v8 = vpop.permute.xlu2 %1183 }
 0x36a   : > { %v1208_v7 = vsel %vm376_vm1, %v1184_v8, 0.0 }
 0x36f   : > { %952 = vadd.xlane.f32.xlu2 %v951_v57  ;;  %v658_v29 = vpop.permute.xlu1 %657 }
 0x370   : > { %v681_v43 = vsel %vm376_vm1, %v658_v29, 0.0 }
 0x371   : > { %v662_v22 = vpop.permute.xlu2 %661 }
 0x372   : > { %v687_v37 = vsel %vm376_vm1, %v662_v22, 0.0 }
 0x377   : > { %v1182_v14 = vpop.permute.xlu1 %1181 }
 0x378   : > { %685 = vadd.xlane.f32.xlu0 %v684_v9  ;;  %v930_v11 = vpop.permute.xlu0 %929  ;;  %v1205_v8 = vsel %vm376_vm1, %v1182_v14, 0.0 }
 0x379   : > { %v954_v56 = vsel %vm376_vm1, %v930_v11, 0.0  ;;  %v1188_v41 = vpop.permute.xlu2 %1187 }
 0x37a   : > { %955 = vadd.xlane.f32.xlu2 %v954_v56 }
 0x37f   : > { %v932_v40 = vpop.permute.xlu1 %931 }
 0x380   : > { %1209 = vadd.xlane.f32.xlu0 %v1208_v7  ;;  %v1186_v27 = vpop.permute.xlu0 %1185  ;;  %v957_v46 = vsel %vm376_vm1, %v932_v40, 0.0 }
 0x381   : > { %v1211_v63 = vsel %vm376_vm1, %v1186_v27, 0.0  ;;  %v1214_v27 = vsel %vm376_vm1, %v1188_v41, 0.0 }
 0x382   : > { %688 = vadd.xlane.f32.xlu2 %v687_v37 }
 0x388   : > { %682 = vadd.xlane.f32.xlu1 %v681_v43  ;;  %958 = vadd.xlane.f32.xlu0 %v957_v46  ;;  %v664_v57 = vpop.permute.xlu0 %663  ;;  %v936_v9 = vpop.permute.xlu2 %935 }
 0x389   : > { %v963_v56 = vsel %vm376_vm1, %v936_v9, 0.0  ;;  %v690_v22 = vsel %vm376_vm1, %v664_v57, 0.0 }
 0x38a   : > { %1212 = vadd.xlane.f32.xlu2 %v1211_v63 }
 0x390   : > { %1206 = vadd.xlane.f32.xlu1 %v1205_v8  ;;  %v934_v11 = vpop.permute.xlu0 %933  ;;  %v938_v43 = vpop.permute.xlu2 %937 }
 0x391   : > { %v960_v37 = vsel %vm376_vm1, %v934_v11, 0.0  ;;  %v966_v9 = vsel %vm376_vm1, %v938_v43, 0.0  ;;  %v451_v43 = vmul.f32 0.03125, %v2338_v49 }
 0x392   : > { %964 = vadd.xlane.f32.xlu2 %v963_v56 }
 0x398   : > { %691 = vadd.xlane.f32.xlu1 %v690_v22  ;;  %v666_v29 = vpop.permute.xlu0 %665  ;;  %v1194_v41 = vpop.permute.xlu2 %1193 }
 0x399   : > { %v693_v7 = vsel %vm376_vm1, %v666_v29, 0.0  ;;  %v1223_v29 = vsel %vm376_vm1, %v1194_v41, 0.0 }
 0x39a   : > { %694 = vadd.xlane.f32.xlu0 %v693_v7 }
 0x3a0   : > { %961 = vadd.xlane.f32.xlu1 %v960_v37  ;;  %v1192_v46 = vpop.permute.xlu0 %1191  ;;  %v672_v37 = vpop.permute.xlu2 %671 }
 0x3a1   : > { %v1220_v11 = vsel %vm376_vm1, %v1192_v46, 0.0 }
 0x3a8   : > { %v1190_v40 = vpop.permute.xlu1 %1189  ;;  %1215 = vadd.xlane.f32.xlu1 %v1214_v27  ;;  %v450_v27 = vmul.f32 0.03125, %v2278_v42 }
 0x3a9   : > { %v1217_v14 = vsel %vm376_vm1, %v1190_v40, 0.0  ;;  %v449_v40 = vmul.f32 0.03125, %v2283_v51  ;;  %v452_v51 = vmul.f32 0.03125, %v2322_v24 }
 0x3aa   : > { %1218 = vadd.xlane.f32.xlu0 %v1217_v14 }
 0x3ab   : > { %v2460_v41 = vadd.f32 1e-05, %v452_v51 }
 0x3ad   : > { %vm501_vm13 = vweird.f32 %v2460_v41 }
 0x3b0   : > { %v668_v63 = vpop.permute.xlu1 %667 }
 0x3b1   : > { %v696_v57 = vsel %vm376_vm1, %v668_v63, 0.0  ;;  %v702_v63 = vsel %vm376_vm1, %v672_v37, 0.0 }
 0x3b2   : > { %697 = vadd.xlane.f32.xlu2 %v696_v57  ;;  %967 = vadd.xlane.f32.xlu0 %v966_v9  ;;  %v458_v57 = vadd.f32 1e-05, %v450_v27  ;;  %v457_v9 = vadd.f32 1e-05, %v449_v40 }
 0x3b4   : > { %1692 = vrsqrt.f32 %v458_v57  ;;  %vm481_vm4 = vweird.f32 %v458_v57  ;;  %vm471_vm7 = vweird.f32 %v457_v9 }
 0x3b5   : > { %1694 = vrsqrt.f32 %v457_v9 }
 0x3b8   : > { %v670_v8 = vpop.permute.xlu0 %669 }
 0x3b9   : > { %v699_v56 = vsel %vm376_vm1, %v670_v8, 0.0  ;;  %v459_v8 = vadd.f32 1e-05, %v451_v43  ;;  %v453_v43 = vmul.f32 0.03125, %v2384_v53 }
 0x3ba   : > { %1221 = vadd.xlane.f32.xlu2 %v1220_v11  ;;  %700 = vadd.xlane.f32.xlu1 %v699_v56  ;;  %v1693_v56 = vpop.eup %1692 }
 0x3bb   : > { %1696 = vrsqrt.f32 %v459_v8  ;;  %v1695_v49 = vpop.eup %1694  ;;  %vm482_vm2 = vweird.f32 %v1693_v56  ;;  %vm491_vm9 = vweird.f32 %v459_v8 }
 0x3bc   : > { %1698 = vrsqrt.f32 %v2460_v41  ;;  %vm472_vm3 = vweird.f32 %v1695_v49  ;;  %vm2476_vm6 = vmor %vm481_vm4, %vm482_vm2 }
 0x3bd   : > { %vm2482_vm8 = vmor %vm471_vm7, %vm472_vm3 }
 0x3c0   : > { %v940_v22 = vpop.permute.xlu0 %939 }
 0x3c1   : > { %v969_v7 = vsel %vm376_vm1, %v940_v22, 0.0  ;;  %v1697_v22 = vpop.eup %1696 }
 0x3c2   : > { %1224 = vadd.xlane.f32.xlu1 %v1223_v29  ;;  %970 = vadd.xlane.f32.xlu0 %v969_v7  ;;  %v476_v29 = vmul.f32 %v1693_v56, %v458_v57  ;;  %v466_v7 = vmul.f32 %v1695_v49, %v457_v9  ;;  %v486_v37 = vmul.f32 %v1697_v22, %v459_v8  ;;  %vm492_vm5 = vweird.f32 %v1697_v22 }
 0x3c3   : > { %vm493_vm10 = vmor %vm491_vm9, %vm492_vm5 }
 0x3c4   : > { %v477_v27 = vmul.f32 %v1693_v56, %v476_v29  ;;  %v467_v40 = vmul.f32 %v1695_v49, %v466_v7 }
 0x3c6   : > { %v468_v24 = vmul.f32 0.5, %v467_v40 }
 0x3c8   : > { %v942_v14 = vpop.permute.xlu1 %941  ;;  %v469_v10 = vsub.f32 1.5, %v468_v24 }
 0x3c9   : > { %v972_v46 = vsel %vm376_vm1, %v942_v14, 0.0  ;;  %v487_v14 = vmul.f32 %v1697_v22, %v486_v37 }
 0x3ca   : > { %973 = vadd.xlane.f32.xlu2 %v972_v46  ;;  %703 = vadd.xlane.f32.xlu0 %v702_v63  ;;  %v2464_v46 = vpop.eup %1698  ;;  %v478_v63 = vmul.f32 0.5, %v477_v27  ;;  %v470_v37 = vmul.f32 %v1695_v49, %v469_v10  ;;  %v454_v27 = vmul.f32 0.03125, %v2370_v21 }
 0x3cb   : > { %v496_v32 = vmul.f32 %v2464_v46, %v2460_v41  ;;  %vm502_vm11 = vweird.f32 %v2464_v46 }
 0x3cc   : > { %v479_v3 = vsub.f32 1.5, %v478_v63  ;;  %v474_v57 = vsel %vm2482_vm8, %v1695_v49, %v470_v37  ;;  %v2490_v24 = vadd.f32 1e-05, %v454_v27  ;;  %vm2512_vm14 = vmor %vm501_vm13, %vm502_vm11 }
 0x3cd   : > { %v497_v53 = vmul.f32 %v2464_v46, %v496_v32 }
 0x3ce   : > { %v480_v7 = vmul.f32 %v1693_v56, %v479_v3 }
 0x3d0   : > { %v1196_v11 = vpop.permute.xlu1 %1195  ;;  %v484_v21 = vsel %vm2476_vm6, %v1693_v56, %v480_v7  ;;  %v545_v7 = vmul.f32 %v474_v57, %v2208_v12 }
 0x3d1   : > { %v1226_v42 = vsel %vm376_vm1, %v1196_v11, 0.0  ;;  %v488_v11 = vmul.f32 0.5, %v487_v14  ;;  %v546_v49 = vmul.f32 %v484_v21, %v2199_v5 }
 0x3d2   : > { %1227 = vadd.xlane.f32.xlu0 %v1226_v42  ;;  %v2466_v42 = vadd.f32 1e-05, %v453_v43  ;;  %v553_v12 = vmul.f32 %v2077_v20, %v545_v7 }
 0x3d3   : > { %v489_v29 = vsub.f32 1.5, %v488_v11  ;;  %v554_v5 = vmul.f32 %v2077_v20, %v546_v49 }
 0x3d4   : > { %1700 = vrsqrt.f32 %v2466_v42  ;;  %vm511_vm8 = vweird.f32 %v2466_v42 }
 0x3d5   : > { %v490_v40 = vmul.f32 %v1697_v22, %v489_v29  ;;  %v2534_v49 = vadd.f32 %v2072_v19, %v554_v5 }
 0x3d7   : > { %v494_v11 = vsel %vm493_vm10, %v1697_v22, %v490_v40 }
 0x3d8   : > { %v547_v22 = vmul.f32 %v494_v11, %v2229_v47 }
 0x3da   : > { %v2480_v63 = vpop.eup %1700  ;;  %v555_v47 = vmul.f32 %v2077_v20, %v547_v22 }
 0x3db   : > { %v506_v8 = vmul.f32 %v2480_v63, %v2466_v42  ;;  %vm512_vm10 = vweird.f32 %v2480_v63 }
 0x3dd   : > { %v507_v14 = vmul.f32 %v2480_v63, %v506_v8 }
 0x3df   : > { %v2528_v8 = vmul.f32 0.5, %v507_v14 }
 0x3e2   : > { %v953_v51 = vpop.xlane.xlu2 %952 }
 0x3e3   : > { %v975_v13 = vmul.f32 0.03125, %v953_v51 }
 0x3e5   : > { %v2470_v26 = vadd.f32 1e-05, %v975_v13  ;;  %v498_v13 = vmul.f32 0.5, %v497_v53 }
 0x3e7   : > { %1702 = vrsqrt.f32 %v2470_v26  ;;  %v499_v18 = vsub.f32 1.5, %v498_v13  ;;  %vm997_vm15 = vweird.f32 %v2470_v26 }
 0x3e9   : > { %v500_v27 = vmul.f32 %v2464_v46, %v499_v18 }
 0x3eb   : > { %v686_v43 = vpop.xlane.xlu0 %685  ;;  %v504_v41 = vsel %vm2512_vm14, %v2464_v46, %v500_v27  ;;  %vm2623_vm14 = vmor %vm511_vm8, %vm512_vm10 }
 0x3ec   : > { %v706_v3 = vmul.f32 0.03125, %v686_v43  ;;  %v2543_v27 = vmul.f32 %v504_v41, %v2220_v38  ;;  %v455_v38 = vmul.f32 0.03125, %v2410_v0 }
 0x3ed   : > { %v1703_v10 = vpop.eup %1702  ;;  %v956_v9 = vpop.xlane.xlu2 %955 }
 0x3ee   : > { %v992_v51 = vmul.f32 %v1703_v10, %v2470_v26  ;;  %v2493_v29 = vadd.f32 1e-05, %v706_v3  ;;  %v976_v53 = vmul.f32 0.03125, %v956_v9  ;;  %vm998_vm12 = vweird.f32 %v1703_v10 }
 0x3ef   : > { %vm999_vm2 = vmor %vm997_vm15, %vm998_vm12 }
 0x3f0   : > { %v993_v43 = vmul.f32 %v1703_v10, %v992_v51  ;;  %1704 = vrsqrt.f32 %v2493_v29  ;;  %v2498_v56 = vadd.f32 1e-05, %v976_v53  ;;  %vm737_vm4 = vweird.f32 %v2493_v29 }
 0x3f1   : > { %1706 = vrsqrt.f32 %v2490_v24 }
 0x3f2   : > { %v994_v37 = vmul.f32 0.5, %v993_v43  ;;  %1708 = vrsqrt.f32 %v2498_v56  ;;  %vm1007_vm7 = vweird.f32 %v2498_v56 }
 0x3f3   : > { %v1210_v40 = vpop.xlane.xlu0 %1209 }
 0x3f4   : > { %v995_v13 = vsub.f32 1.5, %v994_v37  ;;  %v1230_v32 = vmul.f32 0.03125, %v1210_v40  ;;  %v2540_v37 = vadd.f32 %v2072_v19, %v553_v12  ;;  %v509_v12 = vsub.f32 1.5, %v2528_v8 }
 0x3f5   : > { %v689_v3 = vpop.xlane.xlu2 %688 }
 0x3f6   : > { %v1705_v21 = vpop.eup %1704  ;;  %v996_v57 = vmul.f32 %v1703_v10, %v995_v13  ;;  %v2517_v9 = vadd.f32 1e-05, %v1230_v32  ;;  %v707_v11 = vmul.f32 0.03125, %v689_v3 }
 0x3f7   : > { %v2519_v51 = vpop.eup %1706  ;;  %v732_v20 = vmul.f32 %v1705_v21, %v2493_v29  ;;  %vm738_vm3 = vweird.f32 %v1705_v21 }
 0x3f8   : > { %v2526_v53 = vpop.eup %1708  ;;  %v1000_v43 = vsel %vm999_vm2, %v1703_v10, %v996_v57  ;;  %1710 = vrsqrt.f32 %v2517_v9  ;;  %v2531_v26 = vadd.f32 1e-05, %v707_v11  ;;  %v2546_v10 = vadd.f32 %v2072_v19, %v555_v47  ;;  %vm739_vm6 = vmor %vm737_vm4, %vm738_vm3 }
 0x3f9   : > { %v733_v7 = vmul.f32 %v1705_v21, %v732_v20  ;;  %v1002_v46 = vmul.f32 %v2526_v53, %v2498_v56  ;;  %v1071_v22 = vmul.f32 %v1000_v43, %v2286_v52  ;;  %v516_v40 = vmul.f32 %v2519_v51, %v2490_v24 }
 0x3fa   : > { %1712 = vrsqrt.f32 %v2531_v26  ;;  %vm1008_vm5 = vweird.f32 %v2526_v53  ;;  %vm747_vm11 = vweird.f32 %v2531_v26  ;;  %vm1261_vm15 = vweird.f32 %v2517_v9 }
 0x3fb   : > { %v734_v14 = vmul.f32 0.5, %v733_v7  ;;  %v1003_v13 = vmul.f32 %v2526_v53, %v1002_v46  ;;  %v683_v32 = vpop.xlane.xlu1 %682  ;;  %v959_v5 = vpop.xlane.xlu0 %958  ;;  %v1082_v52 = vmul.f32 %v2186_v59, %v1071_v22  ;;  %vm1009_vm9 = vmor %vm1007_vm7, %vm1008_vm5 }
 0x3fc   : > { %v705_v3 = vmul.f32 0.03125, %v683_v32  ;;  %v977_v18 = vmul.f32 0.03125, %v959_v5 }
 0x3fd   : > { %v735_v19 = vsub.f32 1.5, %v734_v14  ;;  %v1004_v47 = vmul.f32 0.5, %v1003_v13  ;;  %v1213_v57 = vpop.xlane.xlu2 %1212  ;;  %v1093_v11 = vadd.f32 %v2144_v36, %v1082_v52  ;;  %v2569_v14 = vadd.f32 1e-05, %v455_v38 }
 0x3fe   : > { %v2556_v41 = vpop.eup %1710  ;;  %v2559_v20 = vadd.f32 1e-05, %v705_v3  ;;  %v2561_v43 = vadd.f32 1e-05, %v977_v18  ;;  %v1231_v7 = vmul.f32 0.03125, %v1213_v57  ;;  %v2581_v3 = vmul.f32 %v2519_v51, %v516_v40 }
 0x3ff   : > { %v736_v8 = vmul.f32 %v1705_v21, %v735_v19  ;;  %v1005_v46 = vsub.f32 1.5, %v1004_v47  ;;  %v1256_v0 = vmul.f32 %v2556_v41, %v2517_v9  ;;  %1363 = vrot.lane.b32.xlu0 %v1093_v11, %s1910_s8  ;;  %v2596_v57 = vmul.f32 %v2480_v63, %v509_v12 }
 0x400   : > { %v2567_v22 = vpop.eup %1712  ;;  %1714 = vrsqrt.f32 %v2559_v20  ;;  %v2574_v29 = vadd.f32 1e-05, %v1231_v7  ;;  %vm1262_vm12 = vweird.f32 %v2556_v41  ;;  %vm727_vm3 = vweird.f32 %v2559_v20 }
 0x401   : > { %v740_v13 = vsel %vm739_vm6, %v1705_v21, %v736_v8  ;;  %v1006_v32 = vmul.f32 %v2526_v53, %v1005_v46  ;;  %v1257_v5 = vmul.f32 %v2556_v41, %v1256_v0  ;;  %v742_v52 = vmul.f32 %v2567_v22, %v2531_v26  ;;  %vm2657_vm4 = vmor %vm1261_vm15, %vm1262_vm12 }
 0x402   : > { %v802_v38 = vmul.f32 %v740_v13, %v2273_v39  ;;  %1716 = vrsqrt.f32 %v2561_v43  ;;  %vm748_vm13 = vweird.f32 %v2567_v22  ;;  %vm1271_vm6 = vweird.f32 %v2574_v29 }
 0x403   : > { %v1010_v56 = vsel %vm1009_vm9, %v2526_v53, %v1006_v32  ;;  %v1258_v21 = vmul.f32 0.5, %v1257_v5  ;;  %v743_v18 = vmul.f32 %v2567_v22, %v742_v52  ;;  %1718 = vrsqrt.f32 %v2574_v29  ;;  %v1207_v19 = vpop.xlane.xlu1 %1206  ;;  %vm749_vm2 = vmor %vm747_vm11, %vm748_vm13 }
 0x404   : > { %v813_v40 = vmul.f32 %v2180_v58, %v802_v38  ;;  %v1229_v47 = vmul.f32 0.03125, %v1207_v19  ;;  %v1072_v39 = vmul.f32 %v1010_v56, %v2298_v6  ;;  %1720 = vrsqrt.f32 %v2569_v14 }
 0x405   : > { %v1259_v11 = vsub.f32 1.5, %v1258_v21  ;;  %v744_v53 = vmul.f32 0.5, %v743_v18  ;;  %v965_v7 = vpop.xlane.xlu2 %964  ;;  %vm1017_vm15 = vweird.f32 %v2561_v43 }
 0x406   : > { %v2599_v8 = vpop.eup %1714  ;;  %v824_v46 = vadd.f32 %v2160_v44, %v813_v40  ;;  %v2603_v0 = vadd.f32 1e-05, %v1229_v47  ;;  %v979_v13 = vmul.f32 0.03125, %v965_v7  ;;  %v1083_v38 = vmul.f32 %v2186_v59, %v1072_v39 }
 0x407   : > { %v745_v6 = vsub.f32 1.5, %v744_v53  ;;  %v722_v12 = vmul.f32 %v2599_v8, %v2559_v20  ;;  %vm728_vm5 = vweird.f32 %v2599_v8 }
 0x408   : > { %v2609_v32 = vpop.eup %1716  ;;  %v832_v5 = vsel %vm376_vm1, %v2534_v49, %v824_v46  ;;  %1722 = vrsqrt.f32 %v2603_v0  ;;  %v2614_v52 = vadd.f32 1e-05, %v979_v13  ;;  %v1260_v49 = vmul.f32 %v2556_v41, %v1259_v11  ;;  %vm729_vm9 = vmor %vm727_vm3, %vm728_vm5 }
 0x409   : > { %v2617_v56 = vpop.eup %1718  ;;  %840 = vst.msk [vmem:[%s2629_s14 + $0x10] sm:$0xff] %vm302_vm0, %v832_v5  ;;  %v746_v18 = vmul.f32 %v2567_v22, %v745_v6  ;;  %v723_v19 = vmul.f32 %v2599_v8, %v722_v12  ;;  %v1012_v40 = vmul.f32 %v2609_v32, %v2561_v43  ;;  %v1094_v6 = vadd.f32 %v2144_v36, %v1083_v38 }
 0x40a   : > { %v1266_v47 = vmul.f32 %v2617_v56, %v2574_v29  ;;  %1724 = vrsqrt.f32 %v2614_v52  ;;  %v2650_v39 = vpop.eup %1720  ;;  %vm1272_vm7 = vweird.f32 %v2617_v56  ;;  %vm1251_vm8 = vweird.f32 %v2603_v0 }
 0x40b   : > { %v750_v11 = vsel %vm749_vm2, %v2567_v22, %v746_v18  ;;  %v724_v53 = vmul.f32 0.5, %v723_v19  ;;  %v1013_v7 = vmul.f32 %v2609_v32, %v1012_v40  ;;  %v692_v9 = vpop.xlane.xlu1 %691  ;;  %v1264_v22 = vsel %vm2657_vm4, %v2556_v41, %v1260_v49  ;;  %1365 = vrot.lane.b32.xlu1 %v1094_v6, %s1910_s8  ;;  %vm2704_vm11 = vmor %vm1271_vm6, %vm1272_vm7 }
 0x40c   : > { %v803_v46 = vmul.f32 %v750_v11, %v2330_v35  ;;  %v1267_v13 = vmul.f32 %v2617_v56, %v1266_v47  ;;  %v708_v12 = vmul.f32 0.03125, %v692_v9  ;;  %vm1018_vm10 = vweird.f32 %v2609_v32 }
 0x40d   : > { %v725_v5 = vsub.f32 1.5, %v724_v53  ;;  %v1014_v18 = vmul.f32 0.5, %v1013_v7  ;;  %v695_v19 = vpop.xlane.xlu0 %694  ;;  %v1326_v7 = vmul.f32 %v1264_v22, %v2313_v17  ;;  %vm2744_vm3 = vmor %vm1017_vm15, %vm1018_vm10  ;;  %vm1037_vm4 = vweird.f32 %v2614_v52 }
 0x40e   : > { %v2668_v40 = vpop.eup %1722  ;;  %v814_v42 = vmul.f32 %v2180_v58, %v803_v46  ;;  %v1268_v54 = vmul.f32 0.5, %v1267_v13  ;;  %v2673_v35 = vadd.f32 1e-05, %v708_v12  ;;  %v709_v49 = vmul.f32 0.03125, %v695_v19 }
 0x40f   : > { %v726_v38 = vmul.f32 %v2599_v8, %v725_v5  ;;  %v1246_v41 = vmul.f32 %v2668_v40, %v2603_v0  ;;  %v1015_v26 = vsub.f32 1.5, %v1014_v18  ;;  %vm1252_vm12 = vweird.f32 %v2668_v40 }
 0x410   : > { %v2680_v47 = vpop.eup %1724  ;;  %v825_v11 = vadd.f32 %v2160_v44, %v814_v42  ;;  %v1269_v53 = vsub.f32 1.5, %v1268_v54  ;;  %1726 = vrsqrt.f32 %v2673_v35  ;;  %v1337_v29 = vmul.f32 %v2164_v45, %v1326_v7  ;;  %vm1253_vm2 = vmor %vm1251_vm8, %vm1252_vm12 }
 0x411   : > { %v730_v9 = vsel %vm729_vm9, %v2599_v8, %v726_v38  ;;  %v1247_v46 = vmul.f32 %v2668_v40, %v1246_v41  ;;  %v1032_v13 = vmul.f32 %v2680_v47, %v2614_v52  ;;  %v1016_v18 = vmul.f32 %v2609_v32, %v1015_v26 }
 0x412   : > { %v833_v42 = vsel %vm376_vm1, %v2546_v10, %v825_v11  ;;  %v801_v6 = vmul.f32 %v730_v9, %v2281_v48  ;;  %v1270_v54 = vmul.f32 %v2617_v56, %v1269_v53  ;;  %v2710_v48 = vadd.f32 1e-05, %v709_v49 }
 0x413   : > { %841 = vst.msk [vmem:[%s2629_s14 + $0x20] sm:$0xff] %vm302_vm0, %v833_v42  ;;  %v1248_v20 = vmul.f32 0.5, %v1247_v46  ;;  %v1033_v10 = vmul.f32 %v2680_v47, %v1032_v13  ;;  %v962_v8 = vpop.xlane.xlu1 %961  ;;  %v1348_v11 = vadd.f32 %v2188_v60, %v1337_v29  ;;  %vm1038_vm13 = vweird.f32 %v2680_v47  ;;  %v2755_v42 = vld [vmem:[%s3094_s2] ss:$0 sm:$0xff] }
 0x414   : > { %v812_v12 = vmul.f32 %v2180_v58, %v801_v6  ;;  %v1274_v22 = vsel %vm2704_vm11, %v2617_v56, %v1270_v54  ;;  %v978_v5 = vmul.f32 0.03125, %v962_v8  ;;  %1728 = vrsqrt.f32 %v2710_v48  ;;  %vm2764_vm5 = vmor %vm1037_vm4, %vm1038_vm13 }
 0x415   : > { %v1249_v19 = vsub.f32 1.5, %v1248_v20  ;;  %v1034_v38 = vmul.f32 0.5, %v1033_v10  ;;  %v1327_v56 = vmul.f32 %v1274_v22, %v2310_v16  ;;  %1397 = vrot.lane.b32.xlu0 %v1348_v11, %s1910_s8  ;;  %v556_v6 = vmul.f32 %v2755_v42, %v2543_v27 }
 0x416   : > { %v2719_v41 = vpop.eup %1726  ;;  %v823_v49 = vadd.f32 %v2160_v44, %v812_v12  ;;  %v2723_v53 = vadd.f32 1e-05, %v978_v5  ;;  %v1020_v54 = vsel %vm2744_vm3, %v2609_v32, %v1016_v18  ;;  %v2771_v10 = vmul.f32 0.5, %v2581_v3 }
 0x417   : > { %v1250_v7 = vmul.f32 %v2668_v40, %v1249_v19  ;;  %v1035_v9 = vsub.f32 1.5, %v1034_v38  ;;  %v752_v26 = vmul.f32 %v2719_v41, %v2673_v35  ;;  %v1338_v16 = vmul.f32 %v2164_v45, %v1327_v56 }
 0x418   : > { %v831_v46 = vsel %vm376_vm1, %v2540_v37, %v823_v49  ;;  %1730 = vrsqrt.f32 %v2723_v53  ;;  %v3142_v27 = vsel %vm2623_vm14, %v2480_v63, %v2596_v57  ;;  %vm758_vm14 = vweird.f32 %v2719_v41 }
 0x419   : > { %839 = vst.msk [vmem:[%s2629_s14] sm:$0xff] %vm302_vm0, %v831_v46  ;;  %v1254_v37 = vsel %vm1253_vm2, %v2668_v40, %v1250_v7  ;;  %v1036_v43 = vmul.f32 %v2680_v47, %v1035_v9  ;;  %v753_v0 = vmul.f32 %v2719_v41, %v752_v26  ;;  %v1349_v52 = vadd.f32 %v2188_v60, %v1338_v16 }
 0x41a   : > { %v1325_v17 = vmul.f32 %v1254_v37, %v2295_v1  ;;  %v1729_v20 = vpop.eup %1728  ;;  %v549_v32 = vmul.f32 %v3142_v27, %v2248_v62  ;;  %v526_v1 = vmul.f32 %v2650_v39, %v2569_v14  ;;  %v1073_v57 = vmul.f32 %v1020_v54, %v2307_v4 }
 0x41b   : > { %v1040_v8 = vsel %vm2764_vm5, %v2680_v47, %v1036_v43  ;;  %v754_v12 = vmul.f32 0.5, %v753_v0  ;;  %v1216_v22 = vpop.xlane.xlu1 %1215  ;;  %v762_v29 = vmul.f32 %v1729_v20, %v2710_v48  ;;  %1399 = vrot.lane.b32.xlu1 %v1349_v52, %s1910_s8  ;;  %vm757_vm6 = vweird.f32 %v2673_v35  ;;  %v2814_v43 = vld [vmem:[%s3095_s3] ss:$0 sm:$0xff] }
 0x41c   : > { %v1232_v3 = vmul.f32 0.03125, %v1216_v22  ;;  %v1336_v21 = vmul.f32 %v2164_v45, %v1325_v17  ;;  %v1075_v63 = vmul.f32 %v1040_v8, %v2362_v25  ;;  %v527_v25 = vmul.f32 %v2650_v39, %v526_v1  ;;  %vm759_vm7 = vmor %vm757_vm6, %vm758_vm14 }
 0x41d   : > { %v755_v5 = vsub.f32 1.5, %v754_v12  ;;  %v1219_v62 = vpop.xlane.xlu0 %1218  ;;  %v763_v18 = vmul.f32 %v1729_v20, %v762_v29  ;;  %v1084_v16 = vmul.f32 %v2186_v59, %v1073_v57  ;;  %vm768_vm8 = vweird.f32 %v1729_v20 }
 0x41e   : > { %v2790_v47 = vpop.eup %1730  ;;  %v2792_v19 = vadd.f32 1e-05, %v1232_v3  ;;  %v1233_v38 = vmul.f32 0.03125, %v1219_v62  ;;  %v1347_v49 = vadd.f32 %v2188_v60, %v1336_v21  ;;  %v1086_v7 = vmul.f32 %v2186_v59, %v1075_v63 }
 0x41f   : > { %v756_v11 = vmul.f32 %v2719_v41, %v755_v5  ;;  %v1022_v56 = vmul.f32 %v2790_v47, %v2723_v53  ;;  %v764_v4 = vmul.f32 0.5, %v763_v18  ;;  %v564_v0 = vadd.f32 %v2814_v43, %v556_v6 }
 0x420   : > { %1732 = vrsqrt.f32 %v2792_v19  ;;  %v2802_v9 = vadd.f32 1e-05, %v1233_v38  ;;  %1395 = vrot.lane.b32.xlu2 %v1347_v49, %s1910_s8  ;;  %v1097_v35 = vadd.f32 %v2144_v36, %v1086_v7  ;;  %v557_v54 = vmul.f32 %v2755_v42, %v549_v32 }
 0x421   : > { %v760_v26 = vsel %vm759_vm7, %v2719_v41, %v756_v11  ;;  %v1023_v46 = vmul.f32 %v2790_v47, %v1022_v56  ;;  %v765_v37 = vsub.f32 1.5, %v764_v4  ;;  %v519_v41 = vsub.f32 1.5, %v2771_v10 }
 0x422   : > { %v804_v13 = vmul.f32 %v760_v26, %v2327_v33  ;;  %1734 = vrsqrt.f32 %v2802_v9  ;;  %v456_v52 = vmul.f32 0.03125, %v2429_v55  ;;  %vm767_vm9 = vweird.f32 %v2710_v48 }
 0x423   : > { %v1024_v40 = vmul.f32 0.5, %v1023_v46  ;;  %v766_v17 = vmul.f32 %v1729_v20, %v765_v37  ;;  %1371 = vrot.lane.b32.xlu1 %v1097_v35, %s1910_s8  ;;  %v528_v27 = vmul.f32 0.5, %v527_v25  ;;  %vm769_vm10 = vmor %vm767_vm9, %vm768_vm8  ;;  %vm1028_vm11 = vweird.f32 %v2790_v47 }
 0x424   : > { %v815_v33 = vmul.f32 %v2180_v58, %v804_v13  ;;  %v1095_v10 = vadd.f32 %v2144_v36, %v1084_v16  ;;  %vm1027_vm12 = vweird.f32 %v2723_v53  ;;  %v2835_v62 = vadd.f32 1e-05, %v456_v52 }
 0x425   : > { %v1025_v8 = vsub.f32 1.5, %v1024_v40  ;;  %v698_v6 = vpop.xlane.xlu2 %697  ;;  %v968_v12 = vpop.xlane.xlu0 %967  ;;  %v770_v22 = vsel %vm769_vm10, %v1729_v20, %v766_v17  ;;  %vm2840_vm13 = vmor %vm1027_vm12, %vm1028_vm11  ;;  %v520_v11 = vmul.f32 %v2519_v51, %v519_v41  ;;  %vm522_vm15 = vweird.f32 %v2519_v51 }
 0x426   : > { %v2825_v32 = vpop.eup %1732  ;;  %v826_v55 = vadd.f32 %v2160_v44, %v815_v33  ;;  %v710_v1 = vmul.f32 0.03125, %v698_v6  ;;  %v980_v29 = vmul.f32 0.03125, %v968_v12  ;;  %v805_v48 = vmul.f32 %v770_v22, %v2353_v2 }
 0x427   : > { %v1026_v3 = vmul.f32 %v2790_v47, %v1025_v8  ;;  %v1276_v21 = vmul.f32 %v2825_v32, %v2792_v19  ;;  %v565_v56 = vadd.f32 %v2814_v43, %v557_v54  ;;  %vm521_vm2 = vweird.f32 %v2490_v24 }
 0x428   : > { %v2833_v5 = vpop.eup %1734  ;;  %v834_v63 = vsel %vm376_vm1, %v564_v0, %v826_v55  ;;  %v2844_v2 = vadd.f32 1e-05, %v710_v1  ;;  %v2846_v57 = vadd.f32 1e-05, %v980_v29  ;;  %1367 = vrot.lane.b32.xlu2 %v1095_v10, %s1910_s8  ;;  %v816_v53 = vmul.f32 %v2180_v58, %v805_v48  ;;  %vm2868_vm3 = vmor %vm521_vm2, %vm522_vm15 }
 0x429   : > { %842 = vst.msk [vmem:[%s2629_s14 + $0x30] sm:$0xff] %vm302_vm0, %v834_v63  ;;  %v1030_v18 = vsel %vm2840_vm13, %v2790_v47, %v1026_v3  ;;  %v1277_v38 = vmul.f32 %v2825_v32, %v1276_v21  ;;  %v1286_v49 = vmul.f32 %v2833_v5, %v2802_v9  ;;  %v529_v47 = vsub.f32 1.5, %v528_v27 }
 0x42a   : > { %1736 = vrsqrt.f32 %v2844_v2  ;;  %v827_v7 = vadd.f32 %v2160_v44, %v816_v53  ;;  %v1074_v26 = vmul.f32 %v1030_v18, %v2341_v50  ;;  %vm1282_vm4 = vweird.f32 %v2825_v32 }
 0x42b   : > { %v1278_v25 = vmul.f32 0.5, %v1277_v38  ;;  %v1287_v4 = vmul.f32 %v2833_v5, %v1286_v49  ;;  %1738 = vrsqrt.f32 %v2846_v57  ;;  %v524_v24 = vsel %vm2868_vm3, %v2519_v51, %v520_v11 }
 0x42c   : > { %1740 = vrsqrt.f32 %v2835_v62  ;;  %v835_v35 = vsel %vm376_vm1, %v565_v56, %v827_v7  ;;  %vm532_vm5 = vweird.f32 %v2650_v39  ;;  %v1085_v41 = vmul.f32 %v2186_v59, %v1074_v26 }
 0x42d   : > { %v1279_v16 = vsub.f32 1.5, %v1278_v25  ;;  %v1288_v13 = vmul.f32 0.5, %v1287_v4  ;;  %v701_v37 = vpop.xlane.xlu1 %700  ;;  %843 = vst.msk [vmem:[%s2629_s14 + $0x40] sm:$0xff] %vm302_vm0, %v835_v35  ;;  %v1222_v50 = vpop.xlane.xlu2 %1221  ;;  %vm1281_vm14 = vweird.f32 %v2792_v19  ;;  %vm1292_vm6 = vweird.f32 %v2833_v5 }
 0x42e   : > { %v711_v0 = vmul.f32 0.03125, %v701_v37  ;;  %v530_v33 = vmul.f32 %v2650_v39, %v529_v47  ;;  %vm2887_vm7 = vmor %vm1281_vm14, %vm1282_vm4  ;;  %vm1291_vm8 = vweird.f32 %v2802_v9  ;;  %v1096_v27 = vadd.f32 %v2144_v36, %v1085_v41 }
 0x42f   : > { %v1280_v54 = vmul.f32 %v2825_v32, %v1279_v16  ;;  %v1289_v40 = vsub.f32 1.5, %v1288_v13  ;;  %v1234_v10 = vmul.f32 0.03125, %v1222_v50  ;;  %vm1293_vm9 = vmor %vm1291_vm8, %vm1292_vm6  ;;  %vm531_vm10 = vweird.f32 %v2569_v14 }
 0x430   : > { %v1737_v52 = vpop.eup %1736  ;;  %v2892_v17 = vadd.f32 1e-05, %v711_v0  ;;  %1369 = vrot.lane.b32.xlu0 %v1096_v27, %s1910_s8  ;;  %vm2910_vm11 = vmor %vm531_vm10, %vm532_vm5  ;;  %vm777_vm15 = vweird.f32 %v2844_v2  ;;  %vm1047_vm3 = vweird.f32 %v2846_v57 }
 0x431   : > { %v1739_v8 = vpop.eup %1738  ;;  %v1284_v19 = vsel %vm2887_vm7, %v2825_v32, %v1280_v54  ;;  %v1290_v6 = vmul.f32 %v2833_v5, %v1289_v40  ;;  %v772_v12 = vmul.f32 %v1737_v52, %v2844_v2  ;;  %v550_v32 = vmul.f32 %v524_v24, %v2239_v61 }
 0x432   : > { %v2900_v55 = vpop.eup %1740  ;;  %v1042_v22 = vmul.f32 %v1739_v8, %v2846_v57  ;;  %1742 = vrsqrt.f32 %v2892_v17  ;;  %v1328_v3 = vmul.f32 %v1284_v19, %v2344_v28  ;;  %v534_v14 = vsel %vm2910_vm11, %v2650_v39, %v530_v33 }
 0x433   : > { %v1294_v9 = vsel %vm1293_vm9, %v2833_v5, %v1290_v6  ;;  %v773_v1 = vmul.f32 %v1737_v52, %v772_v12  ;;  %v536_v5 = vmul.f32 %v2900_v55, %v2835_v62  ;;  %v2921_v61 = vadd.f32 1e-05, %v1234_v10 }
 0x434   : > { %v1043_v48 = vmul.f32 %v1739_v8, %v1042_v22  ;;  %v1329_v21 = vmul.f32 %v1294_v9, %v2376_v34  ;;  %v1339_v11 = vmul.f32 %v2164_v45, %v1328_v3  ;;  %vm778_vm12 = vweird.f32 %v1737_v52 }
 0x435   : > { %v774_v63 = vmul.f32 0.5, %v773_v1  ;;  %v1225_v20 = vpop.xlane.xlu1 %1224  ;;  %v971_v53 = vpop.xlane.xlu0 %970  ;;  %vm1048_vm13 = vweird.f32 %v1739_v8  ;;  %1744 = vrsqrt.f32 %v2921_v61  ;;  %vm779_vm2 = vmor %vm777_vm15, %vm778_vm12  ;;  %v558_v16 = vmul.f32 %v2755_v42, %v550_v32 }
 0x436   : > { %v1044_v18 = vmul.f32 0.5, %v1043_v48  ;;  %v1235_v38 = vmul.f32 0.03125, %v1225_v20  ;;  %v981_v49 = vmul.f32 0.03125, %v971_v53  ;;  %v1340_v34 = vmul.f32 %v2164_v45, %v1329_v21  ;;  %vm1049_vm4 = vmor %vm1047_vm3, %vm1048_vm13 }
 0x437   : > { %v775_v28 = vsub.f32 1.5, %v774_v63  ;;  %v1350_v25 = vadd.f32 %v2188_v60, %v1339_v11  ;;  %v537_v13 = vmul.f32 %v2900_v55, %v536_v5  ;;  %v551_v50 = vmul.f32 %v534_v14, %v2257_v15 }
 0x438   : > { %v1045_v56 = vsub.f32 1.5, %v1044_v18  ;;  %v2925_v39 = vadd.f32 1e-05, %v1235_v38  ;;  %v2927_v7 = vadd.f32 1e-05, %v981_v49  ;;  %v1743_v4 = vpop.eup %1742  ;;  %v1351_v26 = vadd.f32 %v2188_v60, %v1340_v34 }
 0x439   : > { %v776_v47 = vmul.f32 %v1737_v52, %v775_v28  ;;  %v782_v35 = vmul.f32 %v1743_v4, %v2892_v17  ;;  %1401 = vrot.lane.b32.xlu2 %v1350_v25, %s1910_s8  ;;  %v566_v19 = vadd.f32 %v2814_v43, %v558_v16  ;;  %v538_v6 = vmul.f32 0.5, %v537_v13 }
 0x43a   : > { %v1046_v46 = vmul.f32 %v1739_v8, %v1045_v56  ;;  %1746 = vrsqrt.f32 %v2925_v39  ;;  %1403 = vrot.lane.b32.xlu0 %v1351_v26, %s1910_s8  ;;  %vm788_vm5 = vweird.f32 %v1743_v4  ;;  %v559_v9 = vmul.f32 %v2755_v42, %v551_v50  ;;  %v3151_v50 = vld [vmem:[#allocation14_spill] sm:$0xff] }
 0x43b   : > { %v780_v37 = vsel %vm779_vm2, %v1737_v52, %v776_v47  ;;  %1748 = vrsqrt.f32 %v2927_v7  ;;  %v783_v24 = vmul.f32 %v1743_v4, %v782_v35  ;;  %v2946_v27 = vpop.eup %1744  ;;  %vm787_vm14 = vweird.f32 %v2892_v17 }
 0x43c   : > { %v806_v2 = vmul.f32 %v780_v37, %v2390_v30  ;;  %v1050_v57 = vsel %vm1049_vm4, %v1739_v8, %v1046_v46  ;;  %v1296_v48 = vmul.f32 %v2946_v27, %v2921_v61  ;;  %vm789_vm6 = vmor %vm787_vm14, %vm788_vm5  ;;  %v539_v17 = vsub.f32 1.5, %v538_v6 }
 0x43d   : > { %v974_v0 = vpop.xlane.xlu2 %973  ;;  %v704_v41 = vpop.xlane.xlu0 %703  ;;  %v1076_v54 = vmul.f32 %v1050_v57, %v2373_v23  ;;  %v784_v33 = vmul.f32 0.5, %v783_v24  ;;  %v567_v38 = vadd.f32 %v2814_v43, %v559_v9  ;;  %vm542_vm7 = vweird.f32 %v2900_v55 }
 0x43e   : > { %v817_v40 = vmul.f32 %v2180_v58, %v806_v2  ;;  %v982_v52 = vmul.f32 0.03125, %v974_v0  ;;  %v712_v51 = vmul.f32 0.03125, %v704_v41  ;;  %v1297_v49 = vmul.f32 %v2946_v27, %v1296_v48 }
 0x43f   : > { %v1087_v30 = vmul.f32 %v2186_v59, %v1076_v54  ;;  %v785_v12 = vsub.f32 1.5, %v784_v33  ;;  %v540_v25 = vmul.f32 %v2900_v55, %v539_v17  ;;  %vm1311_vm10 = vweird.f32 %v2925_v39 }
 0x440   : > { %v1747_v8 = vpop.eup %1746  ;;  %v828_v15 = vadd.f32 %v2160_v44, %v817_v40  ;;  %v2951_v10 = vadd.f32 1e-05, %v982_v52  ;;  %v2953_v23 = vadd.f32 1e-05, %v712_v51  ;;  %vm1057_vm11 = vweird.f32 %v2927_v7 }
 0x441   : > { %v1749_v22 = vpop.eup %1748  ;;  %v1306_v1 = vmul.f32 %v1747_v8, %v2925_v39  ;;  %v1098_v32 = vadd.f32 %v2144_v36, %v1087_v30  ;;  %v786_v3 = vmul.f32 %v1743_v4, %v785_v12  ;;  %vm1312_vm8 = vweird.f32 %v1747_v8 }
 0x442   : > { %v836_v29 = vsel %vm376_vm1, %v566_v19, %v828_v15  ;;  %v1052_v21 = vmul.f32 %v1749_v22, %v2927_v7  ;;  %1750 = vrsqrt.f32 %v2951_v10  ;;  %vm1058_vm9 = vweird.f32 %v1749_v22  ;;  %vm1313_vm12 = vmor %vm1311_vm10, %vm1312_vm8 }
 0x443   : > { %844 = vst.msk [vmem:[%s2629_s14 + $0x50] sm:$0xff] %vm302_vm0, %v836_v29  ;;  %v1307_v14 = vmul.f32 %v1747_v8, %v1306_v1  ;;  %1373 = vrot.lane.b32.xlu2 %v1098_v32, %s1910_s8  ;;  %v790_v5 = vsel %vm789_vm6, %v1743_v4, %v786_v3  ;;  %1752 = vrsqrt.f32 %v2953_v23  ;;  %v1298_v16 = vmul.f32 0.5, %v1297_v49  ;;  %vm1059_vm15 = vmor %vm1057_vm11, %vm1058_vm9 }
 0x444   : > { %v1053_v63 = vmul.f32 %v1749_v22, %v1052_v21  ;;  %v807_v20 = vmul.f32 %v790_v5, %v2402_v31  ;;  %vm541_vm13 = vweird.f32 %v2835_v62  ;;  %v3152_v62 = vld [vmem:[#allocation16_spill] sm:$0xff]  ;;  %vm1302_vm5 = vweird.f32 %v2946_v27  ;;  %v3154_v5 = vld [vmem:[#allocation17_spill] sm:$0xff] }
 0x445   : > { %v1308_v53 = vmul.f32 0.5, %v1307_v14  ;;  %v1228_v18 = vpop.xlane.xlu0 %1227  ;;  %vm543_vm2 = vmor %vm541_vm13, %vm542_vm7  ;;  %v1299_v33 = vsub.f32 1.5, %v1298_v16  ;;  %vm1067_vm14 = vweird.f32 %v2951_v10  ;;  %vm797_vm7 = vweird.f32 %v2953_v23 }
 0x446   : > { %v1054_v11 = vmul.f32 0.5, %v1053_v63  ;;  %v1236_v28 = vmul.f32 0.03125, %v1228_v18  ;;  %v818_v34 = vmul.f32 %v2180_v58, %v807_v20  ;;  %v544_v41 = vsel %vm543_vm2, %v2900_v55, %v540_v25  ;;  %v3157_v25 = vld [vmem:[#allocation18_spill] sm:$0xff] }
 0x447   : > { %v1309_v56 = vsub.f32 1.5, %v1308_v53  ;;  %v1300_v32 = vmul.f32 %v2946_v27, %v1299_v33  ;;  %vm1301_vm8 = vweird.f32 %v2921_v61  ;;  %v3155_v53 = vld [vmem:[#allocation15_spill] sm:$0xff] }
 0x448   : > { %v1055_v4 = vsub.f32 1.5, %v1054_v11  ;;  %v2975_v47 = vadd.f32 1e-05, %v1236_v28  ;;  %v1751_v31 = vpop.eup %1750  ;;  %v829_v26 = vadd.f32 %v2160_v44, %v818_v34  ;;  %vm1303_vm10 = vmor %vm1301_vm8, %vm1302_vm5  ;;  %v3156_v28 = vld [vmem:[#allocation13_spill] sm:$0xff] }
 0x449   : > { %v1310_v46 = vmul.f32 %v1747_v8, %v1309_v56  ;;  %v1753_v35 = vpop.eup %1752  ;;  %v1062_v37 = vmul.f32 %v1751_v31, %v2951_v10  ;;  %vm1068_vm3 = vweird.f32 %v1751_v31  ;;  %v1304_v20 = vsel %vm1303_vm10, %v2946_v27, %v1300_v32 }
 0x44a   : > { %v1056_v13 = vmul.f32 %v1749_v22, %v1055_v4  ;;  %1754 = vrsqrt.f32 %v2975_v47  ;;  %v837_v2 = vsel %vm376_vm1, %v567_v38, %v829_v26  ;;  %v792_v24 = vmul.f32 %v1753_v35, %v2953_v23  ;;  %vm1069_vm6 = vmor %vm1067_vm14, %vm1068_vm3 }
 0x44b   : > { %v1314_v57 = vsel %vm1313_vm12, %v1747_v8, %v1310_v46  ;;  %845 = vst.msk [vmem:[%s2629_s14 + $0x60] sm:$0xff] %vm302_vm0, %v837_v2  ;;  %v1063_v7 = vmul.f32 %v1751_v31, %v1062_v37  ;;  %v3153_v8 = vld [vmem:[#allocation12_spill] sm:$0xff]  ;;  %vm798_vm4 = vweird.f32 %v1753_v35  ;;  %vm1321_vm12 = vweird.f32 %v2975_v47 }
 0x44c   : > { %v1060_v39 = vsel %vm1059_vm15, %v1749_v22, %v1056_v13  ;;  %v1331_v0 = vmul.f32 %v1314_v57, %v3151_v50  ;;  %v793_v54 = vmul.f32 %v1753_v35, %v792_v24  ;;  %v552_v15 = vmul.f32 %v544_v41, %v3153_v8  ;;  %vm799_vm9 = vmor %vm797_vm7, %vm798_vm4 }
 0x44d   : > { %v1077_v40 = vmul.f32 %v1060_v39, %v3152_v62  ;;  %v1064_v52 = vmul.f32 0.5, %v1063_v7  ;;  %v1330_v34 = vmul.f32 %v1304_v20, %v3156_v28 }
 0x44e   : > { %v1342_v51 = vmul.f32 %v2164_v45, %v1331_v0  ;;  %v794_v19 = vmul.f32 0.5, %v793_v54  ;;  %v560_v10 = vmul.f32 %v2755_v42, %v552_v15 }
 0x44f   : > { %v1088_v6 = vmul.f32 %v2186_v59, %v1077_v40  ;;  %v1065_v12 = vsub.f32 1.5, %v1064_v52 }
 0x450   : > { %v1755_v30 = vpop.eup %1754  ;;  %v1353_v22 = vadd.f32 %v2188_v60, %v1342_v51  ;;  %v795_v9 = vsub.f32 1.5, %v794_v19  ;;  %v568_v42 = vadd.f32 %v2814_v43, %v560_v10 }
 0x451   : > { %v1316_v55 = vmul.f32 %v1755_v30, %v2975_v47  ;;  %v1099_v1 = vadd.f32 %v2144_v36, %v1088_v6  ;;  %v1066_v29 = vmul.f32 %v1751_v31, %v1065_v12  ;;  %vm1322_vm11 = vweird.f32 %v1755_v30 }
 0x452   : > { %1407 = vrot.lane.b32.xlu2 %v1353_v22, %s1910_s8  ;;  %v796_v48 = vmul.f32 %v1753_v35, %v795_v9  ;;  %vm1323_vm13 = vmor %vm1321_vm12, %vm1322_vm11 }
 0x453   : > { %v1317_v3 = vmul.f32 %v1755_v30, %v1316_v55  ;;  %1375 = vrot.lane.b32.xlu0 %v1099_v1, %s1910_s8  ;;  %v1070_v21 = vsel %vm1069_vm6, %v1751_v31, %v1066_v29 }
 0x454   : > { %v800_v14 = vsel %vm799_vm9, %v1753_v35, %v796_v48  ;;  %v1078_v63 = vmul.f32 %v1070_v21, %v3154_v5 }
 0x455   : > { %v1318_v17 = vmul.f32 0.5, %v1317_v3  ;;  %v808_v18 = vmul.f32 %v800_v14, %v3155_v53 }
 0x456   : > { %v1089_v38 = vmul.f32 %v2186_v59, %v1078_v63 }
 0x457   : > { %v1319_v23 = vsub.f32 1.5, %v1318_v17  ;;  %v819_v61 = vmul.f32 %v2180_v58, %v808_v18 }
 0x458   : > { %v1100_v11 = vadd.f32 %v2144_v36, %v1089_v38  ;;  %v1341_v36 = vmul.f32 %v2164_v45, %v1330_v34 }
 0x459   : > { %v1320_v49 = vmul.f32 %v1755_v30, %v1319_v23  ;;  %v830_v27 = vadd.f32 %v2160_v44, %v819_v61 }
 0x45a   : > { %1377 = vrot.lane.b32.xlu1 %v1100_v11, %s1910_s8  ;;  %v1352_v44 = vadd.f32 %v2188_v60, %v1341_v36 }
 0x45b   : > { %v1324_v56 = vsel %vm1323_vm13, %v1755_v30, %v1320_v49  ;;  %v838_v59 = vsel %vm376_vm1, %v568_v42, %v830_v27 }
 0x45c   : > { %v1332_v58 = vmul.f32 %v1324_v56, %v3157_v25  ;;  %846 = vst.msk [vmem:[%s2629_s14 + $0x70] sm:$0xff] %vm302_vm0, %v838_v59 }
 0x45e   : > { %v1343_v4 = vmul.f32 %v2164_v45, %v1332_v58 }
 0x460   : > { %v1354_v43 = vadd.f32 %v2188_v60, %v1343_v4 }
 0x462   : > { %1409 = vrot.lane.b32.xlu0 %v1354_v43, %s1910_s8  ;;  %1405 = vrot.lane.b32.xlu1 %v1352_v44, %s1910_s8 }
 0x471   : > { %v1364_v47 = vpop.permute.xlu0 %1363 }
 0x47a   : > { %v1396_v31 = vpop.permute.xlu2 %1395 }
 0x47b   : > { %v1419_v26 = vsel %vm376_vm1, %v1364_v47, %v1396_v31 }
 0x47c   : > { %1568 = vst.msk [vmem:[%s2629_s14 + $0x8] sm:$0xff] %vm302_vm0, %v1419_v26 }
 0x47d   : > { %v1366_v46 = vpop.permute.xlu1 %1365 }
 0x482   : > { %v1368_v16 = vpop.permute.xlu2 %1367 }
 0x487   : > { %v1398_v35 = vpop.permute.xlu0 %1397 }
 0x488   : > { %v1420_v45 = vsel %vm376_vm1, %v1366_v46, %v1398_v35 }
 0x489   : > { %1569 = vst.msk [vmem:[%s2629_s14 + $0x18] sm:$0xff] %vm302_vm0, %v1420_v45 }
 0x48d   : > { %v1400_v60 = vpop.permute.xlu1 %1399 }
 0x48e   : > { %v1421_v13 = vsel %vm376_vm1, %v1368_v16, %v1400_v60 }
 0x48f   : > { %1570 = vst.msk [vmem:[%s2629_s14 + $0x28] sm:$0xff] %vm302_vm0, %v1421_v13 }
 0x493   : > { %v1402_v37 = vpop.permute.xlu2 %1401 }
 0x495   : > { %v1372_v24 = vpop.permute.xlu1 %1371 }
 0x49d   : > { %v1374_v50 = vpop.permute.xlu2 %1373 }
 0x4a2   : > { %v1370_v2 = vpop.permute.xlu0 %1369 }
 0x4a3   : > { %v1422_v57 = vsel %vm376_vm1, %v1370_v2, %v1402_v37 }
 0x4a4   : > { %1571 = vst.msk [vmem:[%s2629_s14 + $0x38] sm:$0xff] %vm302_vm0, %v1422_v57 }
 0x4ac   : > { %v1404_v39 = vpop.permute.xlu0 %1403  ;;  %v1408_v0 = vpop.permute.xlu2 %1407 }
 0x4ad   : > { %v1423_v7 = vsel %vm376_vm1, %v1372_v24, %v1404_v39 }
 0x4ae   : > { %1572 = vst.msk [vmem:[%s2629_s14 + $0x48] sm:$0xff] %vm302_vm0, %v1423_v7 }
 0x4c5   : > { %v1376_v41 = vpop.permute.xlu0 %1375 }
 0x4c6   : > { %v1425_v54 = vsel %vm376_vm1, %v1376_v41, %v1408_v0 }
 0x4c7   : > { %1574 = vst.msk [vmem:[%s2629_s14 + $0x68] sm:$0xff] %vm302_vm0, %v1425_v54 }
 0x4cc   : > { %v1378_v62 = vpop.permute.xlu1 %1377 }
 0x4d4   : > { %v1410_v40 = vpop.permute.xlu0 %1409  ;;  %v1406_v33 = vpop.permute.xlu1 %1405 }
 0x4d5   : > { %v1426_v52 = vsel %vm376_vm1, %v1378_v62, %v1410_v40  ;;  %v1424_v51 = vsel %vm376_vm1, %v1374_v50, %v1406_v33 }
 0x4d6   : > { %1575 = vst.msk [vmem:[%s2629_s14 + $0x78] sm:$0xff] %vm302_vm0, %v1426_v52 }
 0x4d7   : > { %1573 = vst.msk [vmem:[%s2629_s14 + $0x58] sm:$0xff] %vm302_vm0, %v1424_v51 }
 0x4d8   : > { %1845 = shalt.err (!%p1842_p0)
}
 0x4d9   : > { %s1912_s10 = smov 128   ;;  %s1913_s14 = smov 8  }
 0x4da   : > { %1615 = dma.vmem_to_hbm [thread:$0]  (%p2021_p5), %s1452_s1, 2048, %s1454_s23, %s1437_s18, %s1912_s10, %s1912_s10, %s1913_s14  }
 0x4db PF: > { %s1468_s29 = sand.u32 1, %s1884_s15   ;;  %p1626_p3 = pnand %p1552_p11, %p1988_p6 }
 0x4dc   : > { %s1469_s5 = scalar_lea.sflag [#allocation4], %s1468_s29 }
 0x4dd   : > { %p1627_p7 = pneg %p1626_p3 }
 0x4df   : > { %1879 = dma.done.wait (%p1627_p7), %s1469_s5, 2048  }
 0x4e0   : > { %1881 = vsyncadd (%p1627_p7), %s1469_s5, 4294965248  ;;  %s21_s20 = sadd.s32 1, %s1904_s20   ;;  %s3158_s12 = sld [smem:[#allocation11_spill]] }
 0x4e1   : > { %p18_p9 = scmp.ge.s32.totalorder %s21_s20, 4   ;;  %s3159_s15 = smov %s1888_s16 }
 0x4e2   : > { %s3160_s16 = smov %s1892_s17  ;;  %s3161_s17 = smov %s2030_s22 }
 0x4e3   : > { %s3162_s18 = smov %s1900_s19  ;;  %20 = sbr.rel (!%p18_p9) target bundleno = 9 (0x9), region = 86 }
 0x4e6   : > { %s3163_s19 = smov %s3158_s12 }
 0x4e8   :  { %1475 = vsyncpa [#allocation3], 1 }
 0x4e9   :  { %1477 = vsyncpa [#allocation3 + $0x1], 1 }
 0x4ea   :  { %1478 = vsyncpa [#allocation6], 1 }
 0x4eb   :  { %1479 = vsyncpa [#allocation4], 1 }
 0x4ec   :  { %1481 = vsyncpa [#allocation4 + $0x1], 1 }

</bundles_post_ra>
